<compile_context>
chip_gen: v6e
topology: v6e:2x2x1
jax: 0.10.0
libtpu: 0.0.40
codegen_flags: <defaults>
</compile_context>

<pallas_src>
import math
import functools

import numpy as np
import jax
import jax.numpy as jnp
from jax.experimental import pallas as pl
from jax.experimental.pallas import tpu as pltpu


# feature_enc_layers = [(64,5,1)] + [(128,3,1)]*3 + [(64,3,1)], stride=1, bias=False
CONV_LAYERS = [(64, 5, 1), (128, 3, 1), (128, 3, 1), (128, 3, 1), (64, 3, 1)]
N_MODELS = 4
FEAT_DIM = 64                         # per-channel output width of the conv stack
EMBEDDING_SIZE = N_MODELS * FEAT_DIM  # 256
OUT_LANES = 128                       # lane-dense (padded) logits width
LN_EPS = 1e-5
_TARGET_ROWS = 4096                   # desired matmul M per grid step
_VMEM_LIMIT_BYTES = 48 * 1024 * 1024  # > scoped defaults, < v7x physical 64 MiB


# ---------------------------------------------------------------------------
# Pallas kernel
# ---------------------------------------------------------------------------
def _cnn_classifier_kernel(x_ref, lidx_ref, w1_ref, w2_ref, w3_ref, w4_ref,
                           w5_ref, g_ref, b_ref, wc_ref, bc_ref, out_ref,
                           *, seq_len):
    # x_ref   : (rows, 8)   f32  layer-1 im2col (5 taps + 3 zero pads), rows=(b,m,l)
    # lidx_ref: (rows, 1)   i32  position l inside each length-Lp segment
    # w1..w5  : (k*cin, cout) bf16 im2col conv weights (w1 lane-padded K 5->8)
    # g/b     : (4, 1, 64)  f32  LayerNorm weight/bias split per model channel
    # wc_ref  : (256, 128)  bf16 (lane-padded), bc_ref: (1, 128) f32
    # out_ref : (Bt, Lp, 128) f32
    Bt, Lp, NLP = out_ref.shape
    rows = x_ref.shape[0]                       # == Bt * 4 * Lp

    # Boundary masks, hoisted once and shared by every k=3 layer.  They use the
    # ORIGINAL sequence length so the wrapper's L -> Lp zero padding never
    # leaks into real positions.
    l_idx = lidx_ref[...]                       # (rows, 1) int32
    valid_l = l_idx >= 1                        # left neighbour exists
    valid_r = l_idx < (seq_len - 1)             # right neighbour exists

    def conv3(cur, w_ref):
        # cur: (rows, cin) f32 -> relu(same-pad conv(k=3)) : (rows, cout) f32.
        # Taps realised as XLU sublane rotations; wrapped rows are exactly the
        # positions the boundary masks zero out.
        left = jnp.where(valid_l, pltpu.roll(cur, shift=1, axis=0), 0.0)
        right = jnp.where(valid_r, pltpu.roll(cur, shift=rows - 1, axis=0), 0.0)
        a = jnp.concatenate([left.astype(jnp.bfloat16),
                             cur.astype(jnp.bfloat16),
                             right.astype(jnp.bfloat16)], axis=1)
        h = jnp.dot(a, w_ref[...], preferred_element_type=jnp.float32)
        return jnp.maximum(h, 0.0)

    # ---- conv stack (shared weights; 4 channels x Bt batches fused in M) ----
    h = jnp.dot(x_ref[...].astype(jnp.bfloat16), w1_ref[...],
                preferred_element_type=jnp.float32)          # (rows, 64)
    h = jnp.maximum(h, 0.0)
    h = conv3(h, w2_ref)                                     # (rows, 128)
    h = conv3(h, w3_ref)                                     # (rows, 128)
    h = conv3(h, w4_ref)                                     # (rows, 128)
    h = conv3(h, w5_ref)                                     # (rows, 64)

    # ---- LayerNorm(256), decomposed over the 4 model channels ----
    h4 = h.reshape(Bt, N_MODELS, Lp, FEAT_DIM)
    f = [h4[:, m] for m in range(N_MODELS)]                  # each (Bt, Lp, 64)
    tot = (jnp.sum(f[0], -1, keepdims=True) + jnp.sum(f[1], -1, keepdims=True)
           + jnp.sum(f[2], -1, keepdims=True) + jnp.sum(f[3], -1, keepdims=True))
    mean = tot * (1.0 / EMBEDDING_SIZE)
    d = [fm - mean for fm in f]
    sq = (jnp.sum(d[0] * d[0], -1, keepdims=True)
          + jnp.sum(d[1] * d[1], -1, keepdims=True)
          + jnp.sum(d[2] * d[2], -1, keepdims=True)
          + jnp.sum(d[3] * d[3], -1, keepdims=True))
    inv = jax.lax.rsqrt(sq * (1.0 / EMBEDDING_SIZE) + LN_EPS)   # (Bt, Lp, 1)

    # ---- dropout(0.1): identity (eval semantics) ----
    # ---- classifier: one (Bt*Lp, 256) @ (256, 128) MXU pass (lane-dense) ----
    blocks = []
    for m in range(N_MODELS):
        nm = d[m] * inv * g_ref[m] + b_ref[m]                # (Bt, Lp, 64)
        blocks.append(nm.reshape(Bt * Lp, FEAT_DIM).astype(jnp.bfloat16))
    feats = jnp.concatenate(blocks, axis=1)                  # (Bt*Lp, 256) bf16
    logits = jnp.dot(feats, wc_ref[...],
                     preferred_element_type=jnp.float32) + bc_ref[...]
    out_ref[...] = logits.reshape(Bt, Lp, NLP).astype(out_ref.dtype)


# ---------------------------------------------------------------------------
# Wrapper
# ---------------------------------------------------------------------------
def _pick_batch_block(B, L_pad):
    rows_per_batch = N_MODELS * L_pad
    bt = max(1, _TARGET_ROWS // rows_per_batch)
    # Keep >= 2 grid steps whenever B >= 2 so both v7x TensorCores get work.
    bt = min(bt, max(1, pl.cdiv(B, 2)))
    return min(bt, B)


def model_wise_cnn_logits(x, kparams, num_labels, batch_block=None):
    """x: (B, L, 4) f32 -> logits (B, L, num_labels) f32."""
    B, L, C = x.shape
    assert C == N_MODELS, "ModelWiseCNNClassifier expects 4 per-model channels"
    NLP = kparams["wc"].shape[-1]  # 128 (lane-dense padded)

    L_pad = max(8, pl.cdiv(L, 8) * 8)
    Bt = batch_block if batch_block is not None else _pick_batch_block(B, L_pad)
    nb = pl.cdiv(B, Bt)
    B_pad = nb * Bt

    if B_pad != B or L_pad != L:
        x = jnp.pad(x, ((0, B_pad - B), (0, L_pad - L), (0, 0)))

    # Layer-1 (cin=1, k=5) im2col built in the wrapper on the raw input; the
    # zero padding of x realises both the "same" conv padding and the L->L_pad
    # pad, so layer 1 needs no in-kernel masking.  Lane-padded 5 -> 8.
    xt = jnp.transpose(x, (0, 2, 1)).reshape(B_pad * N_MODELS, L_pad)
    taps = []
    for t in range(5):
        s = t - 2
        if s == 0:
            taps.append(xt)
        elif s > 0:
            taps.append(jnp.pad(xt[:, s:], ((0, 0), (0, s))))
        else:
            taps.append(jnp.pad(xt[:, :s], ((0, 0), (-s, 0))))
    taps += [jnp.zeros_like(xt)] * 3
    x_im2col = jnp.stack(taps, axis=-1).reshape(B_pad * N_MODELS * L_pad, 8)

    row_blk = Bt * N_MODELS * L_pad
    l_idx = jnp.tile(jnp.arange(L_pad, dtype=jnp.int32), Bt * N_MODELS)[:, None]

    w_args = (kparams["w1"], kparams["w2"], kparams["w3"], kparams["w4"],
              kparams["w5"], kparams["gamma"], kparams["beta"],
              kparams["wc"], kparams["bc"])

    in_specs = [
        pl.BlockSpec((row_blk, 8), lambda i: (i, 0)),
        pl.BlockSpec((row_blk, 1), lambda i: (0, 0)),
        pl.BlockSpec(kparams["w1"].shape, lambda i: (0, 0)),
        pl.BlockSpec(kparams["w2"].shape, lambda i: (0, 0)),
        pl.BlockSpec(kparams["w3"].shape, lambda i: (0, 0)),
        pl.BlockSpec(kparams["w4"].shape, lambda i: (0, 0)),
        pl.BlockSpec(kparams["w5"].shape, lambda i: (0, 0)),
        pl.BlockSpec(kparams["gamma"].shape, lambda i: (0, 0, 0)),
        pl.BlockSpec(kparams["beta"].shape, lambda i: (0, 0, 0)),
        pl.BlockSpec(kparams["wc"].shape, lambda i: (0, 0)),
        pl.BlockSpec(kparams["bc"].shape, lambda i: (0, 0)),
    ]

    # Advisory cost estimate for XLA scheduling.
    flops_per_tok = (N_MODELS * 2 * (8 * 64 + 3 * 64 * 128 + 2 * 3 * 128 * 128
                                     + 3 * 128 * 64)
                     + 2 * EMBEDDING_SIZE * NLP)
    weight_bytes = sum(int(w.size) * w.dtype.itemsize for w in w_args)
    bytes_accessed = (int(x_im2col.size) * 4 + int(l_idx.size) * 4
                      + weight_bytes + B_pad * L_pad * NLP * 4)

    out = pl.pallas_call(
        functools.partial(_cnn_classifier_kernel, seq_len=L),
        out_shape=jax.ShapeDtypeStruct((B_pad, L_pad, NLP), jnp.float32),
        grid_spec=pltpu.PrefetchScalarGridSpec(
            num_scalar_prefetch=0,
            grid=(nb,),
            in_specs=in_specs,
            out_specs=pl.BlockSpec((Bt, L_pad, NLP), lambda i: (i, 0, 0)),
        ),
        compiler_params=pltpu.CompilerParams(
            dimension_semantics=("parallel",),
            vmem_limit_bytes=_VMEM_LIMIT_BYTES),
        cost_estimate=pl.CostEstimate(
            flops=int(B_pad * L_pad * flops_per_tok),
            transcendentals=int(B_pad * L_pad),
            bytes_accessed=int(bytes_accessed)),
    )(x_im2col, l_idx, *w_args)

    return out[:B, :L, :num_labels]


# ---------------------------------------------------------------------------
# Loss glue (training branch)
# ---------------------------------------------------------------------------
def cross_entropy_ignore_index(logits, labels, ignore_index=-1):
    """CrossEntropyLoss(ignore_index=-1) over flattened (B*L, num_labels).
    NB: denominator clamped to >=1 (PyTorch yields NaN if all labels ignored)."""
    V = logits.shape[-1]
    flat_logits = logits.reshape(-1, V)
    flat_labels = labels.reshape(-1)
    valid = flat_labels != ignore_index
    safe = jnp.where(valid, flat_labels, 0)
    logz = jax.nn.logsumexp(flat_logits, axis=-1)
    picked = jnp.take_along_axis(flat_logits, safe[:, None], axis=-1)[:, 0]
    nll = jnp.where(valid, logz - picked, 0.0)
    denom = jnp.maximum(jnp.sum(valid.astype(jnp.float32)), 1.0)
    return jnp.sum(nll) / denom


@functools.partial(jax.jit, static_argnames=("num_labels",))
def forward_training(x, labels, kparams, num_labels):
    """Training-branch semantics of ModelWiseCNNClassifier: {'loss', 'logits'}."""
    logits = model_wise_cnn_logits(x, kparams, num_labels)
    loss = cross_entropy_ignore_index(logits, labels, ignore_index=-1)
    return {"loss": loss, "logits": logits}


# ---------------------------------------------------------------------------
# Parameters (synthetic, matching the module's shapes) + packing for the kernel
# ---------------------------------------------------------------------------
def init_params(key, num_labels):
    ks = jax.random.split(key, 9)

    def conv_w(k, cout, cin, ksz):
        # Equivalent to PyTorch Conv1d weight (cout, cin, k), stored (k, cin, cout).
        bound = 1.0 / math.sqrt(cin * ksz)
        return jax.random.uniform(k, (ksz, cin, cout), jnp.float32, -bound, bound)

    lin_bound = 1.0 / math.sqrt(EMBEDDING_SIZE)
    return {
        "w1": conv_w(ks[0], 64, 1, 5),
        "w2": conv_w(ks[1], 128, 64, 3),
        "w3": conv_w(ks[2], 128, 128, 3),
        "w4": conv_w(ks[3], 128, 128, 3),
        "w5": conv_w(ks[4], 64, 128, 3),
        "gamma": 1.0 + 0.1 * jax.random.normal(ks[5], (EMBEDDING_SIZE,), jnp.float32),
        "beta": 0.1 * jax.random.normal(ks[6], (EMBEDDING_SIZE,), jnp.float32),
        "wc": jax.random.uniform(ks[7], (EMBEDDING_SIZE, num_labels),
                                 jnp.float32, -lin_bound, lin_bound),
        "bc": jax.random.uniform(ks[8], (num_labels,),
                                 jnp.float32, -lin_bound, lin_bound),
    }


def pack_params(p):
    """Convert math parameters to the kernel's im2col / lane-dense bf16 layout."""
    def conv2d(w):  # (k, cin, cout) -> (k*cin, cout) bf16
        k, cin, cout = w.shape
        return w.reshape(k * cin, cout).astype(jnp.bfloat16)

    w1 = p["w1"].reshape(5, FEAT_DIM)                       # cin = 1
    w1 = jnp.concatenate([w1, jnp.zeros((3, FEAT_DIM), w1.dtype)], axis=0)
    nl = p["wc"].shape[1]
    wc_pad = jnp.zeros((EMBEDDING_SIZE, OUT_LANES), jnp.float32)
    wc_pad = wc_pad.at[:, :nl].set(p["wc"])
    bc_pad = jnp.zeros((1, OUT_LANES), jnp.float32).at[0, :nl].set(p["bc"])
    return {
        "w1": w1.astype(jnp.bfloat16),
        "w2": conv2d(p["w2"]),
        "w3": conv2d(p["w3"]),
        "w4": conv2d(p["w4"]),
        "w5": conv2d(p["w5"]),
        "gamma": p["gamma"].reshape(N_MODELS, 1, FEAT_DIM).astype(jnp.float32),
        "beta": p["beta"].reshape(N_MODELS, 1, FEAT_DIM).astype(jnp.float32),
        "wc": wc_pad.astype(jnp.bfloat16),
        "bc": bc_pad,
    }


# ---------------------------------------------------------------------------
# Pure-JAX reference (mirrors the bf16 operand rounding of the kernel)
# ---------------------------------------------------------------------------
def reference_logits(x, p):
    B, L, _ = x.shape
    conv_ws = [p["w1"], p["w2"], p["w3"], p["w4"], p["w5"]]
    cur = jnp.transpose(x, (0, 2, 1)).reshape(B * N_MODELS, L, 1)
    for w in conv_ws:
        k, cin, cout = w.shape
        pad = k // 2
        xp = jnp.pad(cur, ((0, 0), (pad, pad), (0, 0)))
        acc = jnp.zeros((B * N_MODELS, L, cout), jnp.float32)
        for t in range(k):
            acc = acc + jnp.einsum(
                "rlc,cd->rld",
                xp[:, t:t + L, :].astype(jnp.bfloat16),
                w[t].astype(jnp.bfloat16),
                preferred_element_type=jnp.float32)
        cur = jnp.maximum(acc, 0.0)
    feats = cur.reshape(B, N_MODELS, L, FEAT_DIM).transpose(0, 2, 1, 3)
    feats = feats.reshape(B, L, EMBEDDING_SIZE)
    mean = feats.mean(-1, keepdims=True)
    var = jnp.mean((feats - mean) ** 2, axis=-1, keepdims=True)
    normed = (feats - mean) * jax.lax.rsqrt(var + LN_EPS)
    normed = normed * p["gamma"] + p["beta"]
    logits = jnp.einsum("bld,dn->bln", normed.astype(jnp.bfloat16),
                        p["wc"].astype(jnp.bfloat16),
                        preferred_element_type=jnp.float32) + p["bc"]
    return logits


# ---------------------------------------------------------------------------
if __name__ == "__main__":
    key = jax.random.PRNGKey(0)
    k_x, k_lab, k_par = jax.random.split(key, 3)

    # forward(x, labels): x is (B, L, 4) before the module's internal transpose.
    B, L, NUM_LABELS = 2, 16, 5
    x = jax.random.normal(k_x, (B, L, N_MODELS), dtype=jnp.float32)
    labels = jax.random.randint(k_lab, (B, L), -1, NUM_LABELS)  # -1 == ignore_index

    params = init_params(k_par, NUM_LABELS)
    kparams = pack_params(params)

    out = forward_training(x, labels, kparams, num_labels=NUM_LABELS)
    jax.block_until_ready(out["logits"])
    jax.block_until_ready(out["loss"])
    assert out["logits"].shape == (B, L, NUM_LABELS)
    assert out["loss"].shape == ()

    ref = reference_logits(x, params)
    np.testing.assert_allclose(np.asarray(out["logits"]), np.asarray(ref),
                               atol=2e-2, rtol=2e-2)

    # Second check exercising L % 8 != 0 (sequence padding) and batch padding.
    B2, L2, NUM_LABELS2 = 3, 13, 3
    k_x2, k_lab2, k_par2 = jax.random.split(jax.random.PRNGKey(1), 3)
    x2 = jax.random.normal(k_x2, (B2, L2, N_MODELS), dtype=jnp.float32)
    labels2 = jax.random.randint(k_lab2, (B2, L2), -1, NUM_LABELS2)
    params2 = init_params(k_par2, NUM_LABELS2)
    kparams2 = pack_params(params2)
    out2 = forward_training(x2, labels2, kparams2, num_labels=NUM_LABELS2)
    jax.block_until_ready(out2["logits"])
    ref2 = reference_logits(x2, params2)
    np.testing.assert_allclose(np.asarray(out2["logits"]), np.asarray(ref2),
                               atol=2e-2, rtol=2e-2)

    print("KERNEL_OK")
</pallas_src>

<mosaic_0001>
module attributes {stable_mosaic.version = 11 : i64} {
  func.func @_cnn_classifier_kernel(%arg0: i32, %arg1: memref<64x8xf32, #tpu.memory_space<vmem>>, %arg2: memref<64x1xi32, #tpu.memory_space<vmem>>, %arg3: memref<8x64xbf16, #tpu.memory_space<vmem>>, %arg4: memref<192x128xbf16, #tpu.memory_space<vmem>>, %arg5: memref<384x128xbf16, #tpu.memory_space<vmem>>, %arg6: memref<384x128xbf16, #tpu.memory_space<vmem>>, %arg7: memref<384x64xbf16, #tpu.memory_space<vmem>>, %arg8: memref<4x1x64xf32, #tpu.memory_space<vmem>>, %arg9: memref<4x1x64xf32, #tpu.memory_space<vmem>>, %arg10: memref<256x128xbf16, #tpu.memory_space<vmem>>, %arg11: memref<1x128xf32, #tpu.memory_space<vmem>>, %arg12: memref<1x16x128xf32, #tpu.memory_space<vmem>>) attributes {dimension_semantics = [#tpu.dimension_semantics<parallel>], iteration_bounds = array<i64: 2>, scalar_prefetch = 0 : i64, scratch_operands = 0 : i64, tpu.core_type = #tpu.core_type<tc>, window_params = [{transform_indices = @transform_0, window_bounds = array<i64: 64, 8>}, {pipeline_mode = #tpu.pipeline_mode<synchronous>, transform_indices = @transform_1, window_bounds = array<i64: 64, 1>}, {pipeline_mode = #tpu.pipeline_mode<synchronous>, transform_indices = @transform_2, window_bounds = array<i64: 8, 64>}, {pipeline_mode = #tpu.pipeline_mode<synchronous>, transform_indices = @transform_3, window_bounds = array<i64: 192, 128>}, {pipeline_mode = #tpu.pipeline_mode<synchronous>, transform_indices = @transform_4, window_bounds = array<i64: 384, 128>}, {pipeline_mode = #tpu.pipeline_mode<synchronous>, transform_indices = @transform_5, window_bounds = array<i64: 384, 128>}, {pipeline_mode = #tpu.pipeline_mode<synchronous>, transform_indices = @transform_6, window_bounds = array<i64: 384, 64>}, {pipeline_mode = #tpu.pipeline_mode<synchronous>, transform_indices = @transform_7, window_bounds = array<i64: 4, 1, 64>}, {pipeline_mode = #tpu.pipeline_mode<synchronous>, transform_indices = @transform_8, window_bounds = array<i64: 4, 1, 64>}, {pipeline_mode = #tpu.pipeline_mode<synchronous>, transform_indices = @transform_9, window_bounds = array<i64: 256, 128>}, {pipeline_mode = #tpu.pipeline_mode<synchronous>, transform_indices = @transform_10, window_bounds = array<i64: 1, 128>}, {transform_indices = @transform_11, window_bounds = array<i64: 1, 16, 128>}]} {
    %c0 = arith.constant 0 : index
    %c0_0 = arith.constant 0 : index
    %0 = vector.load %arg2[%c0, %c0_0] : memref<64x1xi32, #tpu.memory_space<vmem>>, vector<64x1xi32>
    %c1_i32 = arith.constant 1 : i32
    %1 = vector.broadcast %c1_i32 : i32 to vector<64x1xi32>
    %2 = arith.cmpi sge, %0, %1 : vector<64x1xi32>
    %c15_i32 = arith.constant 15 : i32
    %3 = vector.broadcast %c15_i32 : i32 to vector<64x1xi32>
    %4 = arith.cmpi slt, %0, %3 : vector<64x1xi32>
    %c0_1 = arith.constant 0 : index
    %c0_2 = arith.constant 0 : index
    %5 = vector.load %arg1[%c0_1, %c0_2] : memref<64x8xf32, #tpu.memory_space<vmem>>, vector<64x8xf32>
    %6 = arith.truncf %5 : vector<64x8xf32> to vector<64x8xbf16>
    %c0_3 = arith.constant 0 : index
    %c0_4 = arith.constant 0 : index
    %7 = vector.load %arg3[%c0_3, %c0_4] : memref<8x64xbf16, #tpu.memory_space<vmem>>, vector<8x64xbf16>
    %cst = arith.constant dense<0.000000e+00> : vector<64x64xf32>
    %8 = tpu.matmul %6, %7, %cst {dimension_numbers = #tpu.dot_dimension_numbers<[1], [0], [0], [1], [0, 0, 1, 1], [], []>} : vector<64x8xbf16>, vector<8x64xbf16>, vector<64x64xf32> -> vector<64x64xf32>
    %cst_5 = arith.constant 0.000000e+00 : f32
    %9 = vector.broadcast %cst_5 : f32 to vector<64x64xf32>
    %10 = arith.maximumf %8, %9 : vector<64x64xf32>
    %c1_i32_6 = arith.constant 1 : i32
    %11 = tpu.dynamic_rotate %10 by %c1_i32_6 dim 0 : vector<64x64xf32>, i32 -> vector<64x64xf32>
    %cst_7 = arith.constant 0.000000e+00 : f32
    %12 = vector.shape_cast %2 : vector<64x1xi1> to vector<64x1xi1>
    %13 = vector.broadcast %12 : vector<64x1xi1> to vector<64x64xi1>
    %14 = vector.broadcast %cst_7 : f32 to vector<64x64xf32>
    %15 = arith.select %13, %11, %14 : vector<64x64xi1>, vector<64x64xf32>
    %c63_i32 = arith.constant 63 : i32
    %16 = tpu.dynamic_rotate %10 by %c63_i32 dim 0 : vector<64x64xf32>, i32 -> vector<64x64xf32>
    %cst_8 = arith.constant 0.000000e+00 : f32
    %17 = vector.shape_cast %4 : vector<64x1xi1> to vector<64x1xi1>
    %18 = vector.broadcast %17 : vector<64x1xi1> to vector<64x64xi1>
    %19 = vector.broadcast %cst_8 : f32 to vector<64x64xf32>
    %20 = arith.select %18, %16, %19 : vector<64x64xi1>, vector<64x64xf32>
    %21 = arith.truncf %15 : vector<64x64xf32> to vector<64x64xbf16>
    %22 = arith.truncf %10 : vector<64x64xf32> to vector<64x64xbf16>
    %23 = arith.truncf %20 : vector<64x64xf32> to vector<64x64xbf16>
    %24 = tpu.concatenate %21, %22, %23 in 1 : vector<64x64xbf16>, vector<64x64xbf16>, vector<64x64xbf16> -> vector<64x192xbf16>
    %c0_9 = arith.constant 0 : index
    %c0_10 = arith.constant 0 : index
    %25 = vector.load %arg4[%c0_9, %c0_10] : memref<192x128xbf16, #tpu.memory_space<vmem>>, vector<192x128xbf16>
    %cst_11 = arith.constant dense<0.000000e+00> : vector<64x128xf32>
    %26 = tpu.matmul %24, %25, %cst_11 {dimension_numbers = #tpu.dot_dimension_numbers<[1], [0], [0], [1], [0, 0, 1, 1], [], []>} : vector<64x192xbf16>, vector<192x128xbf16>, vector<64x128xf32> -> vector<64x128xf32>
    %cst_12 = arith.constant 0.000000e+00 : f32
    %27 = vector.broadcast %cst_12 : f32 to vector<64x128xf32>
    %28 = arith.maximumf %26, %27 : vector<64x128xf32>
    %c1_i32_13 = arith.constant 1 : i32
    %29 = tpu.dynamic_rotate %28 by %c1_i32_13 dim 0 : vector<64x128xf32>, i32 -> vector<64x128xf32>
    %cst_14 = arith.constant 0.000000e+00 : f32
    %30 = vector.shape_cast %2 : vector<64x1xi1> to vector<64x1xi1>
    %31 = vector.broadcast %30 : vector<64x1xi1> to vector<64x128xi1>
    %32 = vector.broadcast %cst_14 : f32 to vector<64x128xf32>
    %33 = arith.select %31, %29, %32 : vector<64x128xi1>, vector<64x128xf32>
    %c63_i32_15 = arith.constant 63 : i32
    %34 = tpu.dynamic_rotate %28 by %c63_i32_15 dim 0 : vector<64x128xf32>, i32 -> vector<64x128xf32>
    %cst_16 = arith.constant 0.000000e+00 : f32
    %35 = vector.shape_cast %4 : vector<64x1xi1> to vector<64x1xi1>
    %36 = vector.broadcast %35 : vector<64x1xi1> to vector<64x128xi1>
    %37 = vector.broadcast %cst_16 : f32 to vector<64x128xf32>
    %38 = arith.select %36, %34, %37 : vector<64x128xi1>, vector<64x128xf32>
    %39 = arith.truncf %33 : vector<64x128xf32> to vector<64x128xbf16>
    %40 = arith.truncf %28 : vector<64x128xf32> to vector<64x128xbf16>
    %41 = arith.truncf %38 : vector<64x128xf32> to vector<64x128xbf16>
    %42 = tpu.concatenate %39, %40, %41 in 1 : vector<64x128xbf16>, vector<64x128xbf16>, vector<64x128xbf16> -> vector<64x384xbf16>
    %c0_17 = arith.constant 0 : index
    %c0_18 = arith.constant 0 : index
    %43 = vector.load %arg5[%c0_17, %c0_18] : memref<384x128xbf16, #tpu.memory_space<vmem>>, vector<384x128xbf16>
    %cst_19 = arith.constant dense<0.000000e+00> : vector<64x128xf32>
    %44 = tpu.matmul %42, %43, %cst_19 {dimension_numbers = #tpu.dot_dimension_numbers<[1], [0], [0], [1], [0, 0, 1, 1], [], []>} : vector<64x384xbf16>, vector<384x128xbf16>, vector<64x128xf32> -> vector<64x128xf32>
    %cst_20 = arith.constant 0.000000e+00 : f32
    %45 = vector.broadcast %cst_20 : f32 to vector<64x128xf32>
    %46 = arith.maximumf %44, %45 : vector<64x128xf32>
    %c1_i32_21 = arith.constant 1 : i32
    %47 = tpu.dynamic_rotate %46 by %c1_i32_21 dim 0 : vector<64x128xf32>, i32 -> vector<64x128xf32>
    %cst_22 = arith.constant 0.000000e+00 : f32
    %48 = vector.shape_cast %2 : vector<64x1xi1> to vector<64x1xi1>
    %49 = vector.broadcast %48 : vector<64x1xi1> to vector<64x128xi1>
    %50 = vector.broadcast %cst_22 : f32 to vector<64x128xf32>
    %51 = arith.select %49, %47, %50 : vector<64x128xi1>, vector<64x128xf32>
    %c63_i32_23 = arith.constant 63 : i32
    %52 = tpu.dynamic_rotate %46 by %c63_i32_23 dim 0 : vector<64x128xf32>, i32 -> vector<64x128xf32>
    %cst_24 = arith.constant 0.000000e+00 : f32
    %53 = vector.shape_cast %4 : vector<64x1xi1> to vector<64x1xi1>
    %54 = vector.broadcast %53 : vector<64x1xi1> to vector<64x128xi1>
    %55 = vector.broadcast %cst_24 : f32 to vector<64x128xf32>
    %56 = arith.select %54, %52, %55 : vector<64x128xi1>, vector<64x128xf32>
    %57 = arith.truncf %51 : vector<64x128xf32> to vector<64x128xbf16>
    %58 = arith.truncf %46 : vector<64x128xf32> to vector<64x128xbf16>
    %59 = arith.truncf %56 : vector<64x128xf32> to vector<64x128xbf16>
    %60 = tpu.concatenate %57, %58, %59 in 1 : vector<64x128xbf16>, vector<64x128xbf16>, vector<64x128xbf16> -> vector<64x384xbf16>
    %c0_25 = arith.constant 0 : index
    %c0_26 = arith.constant 0 : index
    %61 = vector.load %arg6[%c0_25, %c0_26] : memref<384x128xbf16, #tpu.memory_space<vmem>>, vector<384x128xbf16>
    %cst_27 = arith.constant dense<0.000000e+00> : vector<64x128xf32>
    %62 = tpu.matmul %60, %61, %cst_27 {dimension_numbers = #tpu.dot_dimension_numbers<[1], [0], [0], [1], [0, 0, 1, 1], [], []>} : vector<64x384xbf16>, vector<384x128xbf16>, vector<64x128xf32> -> vector<64x128xf32>
    %cst_28 = arith.constant 0.000000e+00 : f32
    %63 = vector.broadcast %cst_28 : f32 to vector<64x128xf32>
    %64 = arith.maximumf %62, %63 : vector<64x128xf32>
    %c1_i32_29 = arith.constant 1 : i32
    %65 = tpu.dynamic_rotate %64 by %c1_i32_29 dim 0 : vector<64x128xf32>, i32 -> vector<64x128xf32>
    %cst_30 = arith.constant 0.000000e+00 : f32
    %66 = vector.shape_cast %2 : vector<64x1xi1> to vector<64x1xi1>
    %67 = vector.broadcast %66 : vector<64x1xi1> to vector<64x128xi1>
    %68 = vector.broadcast %cst_30 : f32 to vector<64x128xf32>
    %69 = arith.select %67, %65, %68 : vector<64x128xi1>, vector<64x128xf32>
    %c63_i32_31 = arith.constant 63 : i32
    %70 = tpu.dynamic_rotate %64 by %c63_i32_31 dim 0 : vector<64x128xf32>, i32 -> vector<64x128xf32>
    %cst_32 = arith.constant 0.000000e+00 : f32
    %71 = vector.shape_cast %4 : vector<64x1xi1> to vector<64x1xi1>
    %72 = vector.broadcast %71 : vector<64x1xi1> to vector<64x128xi1>
    %73 = vector.broadcast %cst_32 : f32 to vector<64x128xf32>
    %74 = arith.select %72, %70, %73 : vector<64x128xi1>, vector<64x128xf32>
    %75 = arith.truncf %69 : vector<64x128xf32> to vector<64x128xbf16>
    %76 = arith.truncf %64 : vector<64x128xf32> to vector<64x128xbf16>
    %77 = arith.truncf %74 : vector<64x128xf32> to vector<64x128xbf16>
    %78 = tpu.concatenate %75, %76, %77 in 1 : vector<64x128xbf16>, vector<64x128xbf16>, vector<64x128xbf16> -> vector<64x384xbf16>
    %c0_33 = arith.constant 0 : index
    %c0_34 = arith.constant 0 : index
    %79 = vector.load %arg7[%c0_33, %c0_34] : memref<384x64xbf16, #tpu.memory_space<vmem>>, vector<384x64xbf16>
    %cst_35 = arith.constant dense<0.000000e+00> : vector<64x64xf32>
    %80 = tpu.matmul %78, %79, %cst_35 {dimension_numbers = #tpu.dot_dimension_numbers<[1], [0], [0], [1], [0, 0, 1, 1], [], []>} : vector<64x384xbf16>, vector<384x64xbf16>, vector<64x64xf32> -> vector<64x64xf32>
    %cst_36 = arith.constant 0.000000e+00 : f32
    %81 = vector.broadcast %cst_36 : f32 to vector<64x64xf32>
    %82 = arith.maximumf %80, %81 : vector<64x64xf32>
    %83 = vector.shape_cast %82 : vector<64x64xf32> to vector<1x4x16x64xf32>
    %84 = vector.extract_strided_slice %83 {offsets = [0, 0, 0, 0], sizes = [1, 1, 16, 64], strides = [1, 1, 1, 1]} : vector<1x4x16x64xf32> to vector<1x1x16x64xf32>
    %85 = vector.shape_cast %84 : vector<1x1x16x64xf32> to vector<1x16x64xf32>
    %86 = vector.extract_strided_slice %83 {offsets = [0, 1, 0, 0], sizes = [1, 1, 16, 64], strides = [1, 1, 1, 1]} : vector<1x4x16x64xf32> to vector<1x1x16x64xf32>
    %87 = vector.shape_cast %86 : vector<1x1x16x64xf32> to vector<1x16x64xf32>
    %88 = vector.extract_strided_slice %83 {offsets = [0, 2, 0, 0], sizes = [1, 1, 16, 64], strides = [1, 1, 1, 1]} : vector<1x4x16x64xf32> to vector<1x1x16x64xf32>
    %89 = vector.shape_cast %88 : vector<1x1x16x64xf32> to vector<1x16x64xf32>
    %90 = vector.extract_strided_slice %83 {offsets = [0, 3, 0, 0], sizes = [1, 1, 16, 64], strides = [1, 1, 1, 1]} : vector<1x4x16x64xf32> to vector<1x1x16x64xf32>
    %91 = vector.shape_cast %90 : vector<1x1x16x64xf32> to vector<1x16x64xf32>
    %cst_37 = arith.constant dense<0.000000e+00> : vector<1x16xf32>
    %92 = vector.multi_reduction <add>, %85, %cst_37 [2] : vector<1x16x64xf32> to vector<1x16xf32>
    %93 = vector.shape_cast %92 : vector<1x16xf32> to vector<1x16x1xf32>
    %cst_38 = arith.constant dense<0.000000e+00> : vector<1x16xf32>
    %94 = vector.multi_reduction <add>, %87, %cst_38 [2] : vector<1x16x64xf32> to vector<1x16xf32>
    %95 = vector.shape_cast %94 : vector<1x16xf32> to vector<1x16x1xf32>
    %96 = arith.addf %93, %95 : vector<1x16x1xf32>
    %cst_39 = arith.constant dense<0.000000e+00> : vector<1x16xf32>
    %97 = vector.multi_reduction <add>, %89, %cst_39 [2] : vector<1x16x64xf32> to vector<1x16xf32>
    %98 = vector.shape_cast %97 : vector<1x16xf32> to vector<1x16x1xf32>
    %99 = arith.addf %96, %98 : vector<1x16x1xf32>
    %cst_40 = arith.constant dense<0.000000e+00> : vector<1x16xf32>
    %100 = vector.multi_reduction <add>, %91, %cst_40 [2] : vector<1x16x64xf32> to vector<1x16xf32>
    %101 = vector.shape_cast %100 : vector<1x16xf32> to vector<1x16x1xf32>
    %102 = arith.addf %99, %101 : vector<1x16x1xf32>
    %cst_41 = arith.constant 3.906250e-03 : f32
    %103 = vector.broadcast %cst_41 : f32 to vector<1x16x1xf32>
    %104 = arith.mulf %102, %103 : vector<1x16x1xf32>
    %105 = vector.broadcast %104 : vector<1x16x1xf32> to vector<1x16x64xf32>
    %106 = arith.subf %85, %105 : vector<1x16x64xf32>
    %107 = vector.broadcast %104 : vector<1x16x1xf32> to vector<1x16x64xf32>
    %108 = arith.subf %87, %107 : vector<1x16x64xf32>
    %109 = vector.broadcast %104 : vector<1x16x1xf32> to vector<1x16x64xf32>
    %110 = arith.subf %89, %109 : vector<1x16x64xf32>
    %111 = vector.broadcast %104 : vector<1x16x1xf32> to vector<1x16x64xf32>
    %112 = arith.subf %91, %111 : vector<1x16x64xf32>
    %113 = arith.mulf %106, %106 : vector<1x16x64xf32>
    %cst_42 = arith.constant dense<0.000000e+00> : vector<1x16xf32>
    %114 = vector.multi_reduction <add>, %113, %cst_42 [2] : vector<1x16x64xf32> to vector<1x16xf32>
    %115 = vector.shape_cast %114 : vector<1x16xf32> to vector<1x16x1xf32>
    %116 = arith.mulf %108, %108 : vector<1x16x64xf32>
    %cst_43 = arith.constant dense<0.000000e+00> : vector<1x16xf32>
    %117 = vector.multi_reduction <add>, %116, %cst_43 [2] : vector<1x16x64xf32> to vector<1x16xf32>
    %118 = vector.shape_cast %117 : vector<1x16xf32> to vector<1x16x1xf32>
    %119 = arith.addf %115, %118 : vector<1x16x1xf32>
    %120 = arith.mulf %110, %110 : vector<1x16x64xf32>
    %cst_44 = arith.constant dense<0.000000e+00> : vector<1x16xf32>
    %121 = vector.multi_reduction <add>, %120, %cst_44 [2] : vector<1x16x64xf32> to vector<1x16xf32>
    %122 = vector.shape_cast %121 : vector<1x16xf32> to vector<1x16x1xf32>
    %123 = arith.addf %119, %122 : vector<1x16x1xf32>
    %124 = arith.mulf %112, %112 : vector<1x16x64xf32>
    %cst_45 = arith.constant dense<0.000000e+00> : vector<1x16xf32>
    %125 = vector.multi_reduction <add>, %124, %cst_45 [2] : vector<1x16x64xf32> to vector<1x16xf32>
    %126 = vector.shape_cast %125 : vector<1x16xf32> to vector<1x16x1xf32>
    %127 = arith.addf %123, %126 : vector<1x16x1xf32>
    %cst_46 = arith.constant 3.906250e-03 : f32
    %128 = vector.broadcast %cst_46 : f32 to vector<1x16x1xf32>
    %129 = arith.mulf %127, %128 : vector<1x16x1xf32>
    %cst_47 = arith.constant 9.99999974E-6 : f32
    %130 = vector.broadcast %cst_47 : f32 to vector<1x16x1xf32>
    %131 = arith.addf %129, %130 : vector<1x16x1xf32>
    %132 = math.rsqrt %131 : vector<1x16x1xf32>
    %133 = vector.broadcast %132 : vector<1x16x1xf32> to vector<1x16x64xf32>
    %134 = arith.mulf %106, %133 : vector<1x16x64xf32>
    %c0_48 = arith.constant 0 : index
    %c0_49 = arith.constant 0 : index
    %c0_50 = arith.constant 0 : index
    %135 = vector.load %arg8[%c0_48, %c0_49, %c0_50] : memref<4x1x64xf32, #tpu.memory_space<vmem>>, vector<1x1x64xf32>
    %136 = vector.shape_cast %135 : vector<1x1x64xf32> to vector<1x64xf32>
    %137 = vector.shape_cast %136 : vector<1x64xf32> to vector<1x1x64xf32>
    %138 = vector.broadcast %137 : vector<1x1x64xf32> to vector<1x16x64xf32>
    %139 = arith.mulf %134, %138 : vector<1x16x64xf32>
    %c0_51 = arith.constant 0 : index
    %c0_52 = arith.constant 0 : index
    %c0_53 = arith.constant 0 : index
    %140 = vector.load %arg9[%c0_51, %c0_52, %c0_53] : memref<4x1x64xf32, #tpu.memory_space<vmem>>, vector<1x1x64xf32>
    %141 = vector.shape_cast %140 : vector<1x1x64xf32> to vector<1x64xf32>
    %142 = vector.shape_cast %141 : vector<1x64xf32> to vector<1x1x64xf32>
    %143 = vector.broadcast %142 : vector<1x1x64xf32> to vector<1x16x64xf32>
    %144 = arith.addf %139, %143 : vector<1x16x64xf32>
    %145 = vector.shape_cast %144 : vector<1x16x64xf32> to vector<16x64xf32>
    %146 = arith.truncf %145 : vector<16x64xf32> to vector<16x64xbf16>
    %147 = vector.broadcast %132 : vector<1x16x1xf32> to vector<1x16x64xf32>
    %148 = arith.mulf %108, %147 : vector<1x16x64xf32>
    %c1 = arith.constant 1 : index
    %c0_54 = arith.constant 0 : index
    %c0_55 = arith.constant 0 : index
    %149 = vector.load %arg8[%c1, %c0_54, %c0_55] : memref<4x1x64xf32, #tpu.memory_space<vmem>>, vector<1x1x64xf32>
    %150 = vector.shape_cast %149 : vector<1x1x64xf32> to vector<1x64xf32>
    %151 = vector.shape_cast %150 : vector<1x64xf32> to vector<1x1x64xf32>
    %152 = vector.broadcast %151 : vector<1x1x64xf32> to vector<1x16x64xf32>
    %153 = arith.mulf %148, %152 : vector<1x16x64xf32>
    %c1_56 = arith.constant 1 : index
    %c0_57 = arith.constant 0 : index
    %c0_58 = arith.constant 0 : index
    %154 = vector.load %arg9[%c1_56, %c0_57, %c0_58] : memref<4x1x64xf32, #tpu.memory_space<vmem>>, vector<1x1x64xf32>
    %155 = vector.shape_cast %154 : vector<1x1x64xf32> to vector<1x64xf32>
    %156 = vector.shape_cast %155 : vector<1x64xf32> to vector<1x1x64xf32>
    %157 = vector.broadcast %156 : vector<1x1x64xf32> to vector<1x16x64xf32>
    %158 = arith.addf %153, %157 : vector<1x16x64xf32>
    %159 = vector.shape_cast %158 : vector<1x16x64xf32> to vector<16x64xf32>
    %160 = arith.truncf %159 : vector<16x64xf32> to vector<16x64xbf16>
    %161 = vector.broadcast %132 : vector<1x16x1xf32> to vector<1x16x64xf32>
    %162 = arith.mulf %110, %161 : vector<1x16x64xf32>
    %c2 = arith.constant 2 : index
    %c0_59 = arith.constant 0 : index
    %c0_60 = arith.constant 0 : index
    %163 = vector.load %arg8[%c2, %c0_59, %c0_60] : memref<4x1x64xf32, #tpu.memory_space<vmem>>, vector<1x1x64xf32>
    %164 = vector.shape_cast %163 : vector<1x1x64xf32> to vector<1x64xf32>
    %165 = vector.shape_cast %164 : vector<1x64xf32> to vector<1x1x64xf32>
    %166 = vector.broadcast %165 : vector<1x1x64xf32> to vector<1x16x64xf32>
    %167 = arith.mulf %162, %166 : vector<1x16x64xf32>
    %c2_61 = arith.constant 2 : index
    %c0_62 = arith.constant 0 : index
    %c0_63 = arith.constant 0 : index
    %168 = vector.load %arg9[%c2_61, %c0_62, %c0_63] : memref<4x1x64xf32, #tpu.memory_space<vmem>>, vector<1x1x64xf32>
    %169 = vector.shape_cast %168 : vector<1x1x64xf32> to vector<1x64xf32>
    %170 = vector.shape_cast %169 : vector<1x64xf32> to vector<1x1x64xf32>
    %171 = vector.broadcast %170 : vector<1x1x64xf32> to vector<1x16x64xf32>
    %172 = arith.addf %167, %171 : vector<1x16x64xf32>
    %173 = vector.shape_cast %172 : vector<1x16x64xf32> to vector<16x64xf32>
    %174 = arith.truncf %173 : vector<16x64xf32> to vector<16x64xbf16>
    %175 = vector.broadcast %132 : vector<1x16x1xf32> to vector<1x16x64xf32>
    %176 = arith.mulf %112, %175 : vector<1x16x64xf32>
    %c3 = arith.constant 3 : index
    %c0_64 = arith.constant 0 : index
    %c0_65 = arith.constant 0 : index
    %177 = vector.load %arg8[%c3, %c0_64, %c0_65] : memref<4x1x64xf32, #tpu.memory_space<vmem>>, vector<1x1x64xf32>
    %178 = vector.shape_cast %177 : vector<1x1x64xf32> to vector<1x64xf32>
    %179 = vector.shape_cast %178 : vector<1x64xf32> to vector<1x1x64xf32>
    %180 = vector.broadcast %179 : vector<1x1x64xf32> to vector<1x16x64xf32>
    %181 = arith.mulf %176, %180 : vector<1x16x64xf32>
    %c3_66 = arith.constant 3 : index
    %c0_67 = arith.constant 0 : index
    %c0_68 = arith.constant 0 : index
    %182 = vector.load %arg9[%c3_66, %c0_67, %c0_68] : memref<4x1x64xf32, #tpu.memory_space<vmem>>, vector<1x1x64xf32>
    %183 = vector.shape_cast %182 : vector<1x1x64xf32> to vector<1x64xf32>
    %184 = vector.shape_cast %183 : vector<1x64xf32> to vector<1x1x64xf32>
    %185 = vector.broadcast %184 : vector<1x1x64xf32> to vector<1x16x64xf32>
    %186 = arith.addf %181, %185 : vector<1x16x64xf32>
    %187 = vector.shape_cast %186 : vector<1x16x64xf32> to vector<16x64xf32>
    %188 = arith.truncf %187 : vector<16x64xf32> to vector<16x64xbf16>
    %189 = tpu.concatenate %146, %160, %174, %188 in 1 : vector<16x64xbf16>, vector<16x64xbf16>, vector<16x64xbf16>, vector<16x64xbf16> -> vector<16x256xbf16>
    %c0_69 = arith.constant 0 : index
    %c0_70 = arith.constant 0 : index
    %190 = vector.load %arg10[%c0_69, %c0_70] : memref<256x128xbf16, #tpu.memory_space<vmem>>, vector<256x128xbf16>
    %cst_71 = arith.constant dense<0.000000e+00> : vector<16x128xf32>
    %191 = tpu.matmul %189, %190, %cst_71 {dimension_numbers = #tpu.dot_dimension_numbers<[1], [0], [0], [1], [0, 0, 1, 1], [], []>} : vector<16x256xbf16>, vector<256x128xbf16>, vector<16x128xf32> -> vector<16x128xf32>
    %c0_72 = arith.constant 0 : index
    %c0_73 = arith.constant 0 : index
    %192 = vector.load %arg11[%c0_72, %c0_73] : memref<1x128xf32, #tpu.memory_space<vmem>>, vector<1x128xf32>
    %193 = vector.broadcast %192 : vector<1x128xf32> to vector<16x128xf32>
    %194 = arith.addf %191, %193 : vector<16x128xf32>
    %195 = vector.shape_cast %194 : vector<16x128xf32> to vector<1x16x128xf32>
    %c0_74 = arith.constant 0 : index
    %c0_75 = arith.constant 0 : index
    %c0_76 = arith.constant 0 : index
    %196 = vector.load %arg12[%c0_74, %c0_75, %c0_76] : memref<1x16x128xf32, #tpu.memory_space<vmem>>, vector<1x16x128xf32>
    tpu.vector_store %arg12[%c0_74, %c0_75, %c0_76], %195 {strides = array<i32>} : memref<1x16x128xf32, #tpu.memory_space<vmem>>, vector<1x16x128xf32>,
    return
  }
  func.func @transform_0(%arg0: i32) -> (i32, i32) {
    %c0_i32 = arith.constant 0 : i32
    %c0_i32_0 = arith.constant 0 : i32
    return %arg0, %c0_i32 : i32, i32
  }
  func.func @transform_1(%arg0: i32) -> (i32, i32) {
    %c0_i32 = arith.constant 0 : i32
    %c0_i32_0 = arith.constant 0 : i32
    %c0_i32_1 = arith.constant 0 : i32
    return %c0_i32, %c0_i32_0 : i32, i32
  }
  func.func @transform_2(%arg0: i32) -> (i32, i32) {
    %c0_i32 = arith.constant 0 : i32
    %c0_i32_0 = arith.constant 0 : i32
    %c0_i32_1 = arith.constant 0 : i32
    return %c0_i32, %c0_i32_0 : i32, i32
  }
  func.func @transform_3(%arg0: i32) -> (i32, i32) {
    %c0_i32 = arith.constant 0 : i32
    %c0_i32_0 = arith.constant 0 : i32
    %c0_i32_1 = arith.constant 0 : i32
    return %c0_i32, %c0_i32_0 : i32, i32
  }
  func.func @transform_4(%arg0: i32) -> (i32, i32) {
    %c0_i32 = arith.constant 0 : i32
    %c0_i32_0 = arith.constant 0 : i32
    %c0_i32_1 = arith.constant 0 : i32
    return %c0_i32, %c0_i32_0 : i32, i32
  }
  func.func @transform_5(%arg0: i32) -> (i32, i32) {
    %c0_i32 = arith.constant 0 : i32
    %c0_i32_0 = arith.constant 0 : i32
    %c0_i32_1 = arith.constant 0 : i32
    return %c0_i32, %c0_i32_0 : i32, i32
  }
  func.func @transform_6(%arg0: i32) -> (i32, i32) {
    %c0_i32 = arith.constant 0 : i32
    %c0_i32_0 = arith.constant 0 : i32
    %c0_i32_1 = arith.constant 0 : i32
    return %c0_i32, %c0_i32_0 : i32, i32
  }
  func.func @transform_7(%arg0: i32) -> (i32, i32, i32) {
    %c0_i32 = arith.constant 0 : i32
    %c0_i32_0 = arith.constant 0 : i32
    %c0_i32_1 = arith.constant 0 : i32
    %c0_i32_2 = arith.constant 0 : i32
    return %c0_i32, %c0_i32_0, %c0_i32_1 : i32, i32, i32
  }
  func.func @transform_8(%arg0: i32) -> (i32, i32, i32) {
    %c0_i32 = arith.constant 0 : i32
    %c0_i32_0 = arith.constant 0 : i32
    %c0_i32_1 = arith.constant 0 : i32
    %c0_i32_2 = arith.constant 0 : i32
    return %c0_i32, %c0_i32_0, %c0_i32_1 : i32, i32, i32
  }
  func.func @transform_9(%arg0: i32) -> (i32, i32) {
    %c0_i32 = arith.constant 0 : i32
    %c0_i32_0 = arith.constant 0 : i32
    %c0_i32_1 = arith.constant 0 : i32
    return %c0_i32, %c0_i32_0 : i32, i32
  }
  func.func @transform_10(%arg0: i32) -> (i32, i32) {
    %c0_i32 = arith.constant 0 : i32
    %c0_i32_0 = arith.constant 0 : i32
    %c0_i32_1 = arith.constant 0 : i32
    return %c0_i32, %c0_i32_0 : i32, i32
  }
  func.func @transform_11(%arg0: i32) -> (i32, i32, i32) {
    %c0_i32 = arith.constant 0 : i32
    %c0_i32_0 = arith.constant 0 : i32
    %c0_i32_1 = arith.constant 0 : i32
    return %arg0, %c0_i32, %c0_i32_0 : i32, i32, i32
  }
}

</mosaic_0001>

<bundles_post_ra>
// kernel: tile.0
= control target key start
LH: loop header
LB: loop body
LE: loop exit
PB: predicated region body
PF: predicated region fallthrough
CT: control target
= control target key end

     0   :  { %s177_s8 = smov 125   ;;  %s178_s9 = smov 126   ;;  %vm8_vm0 = vcmask 7168   ;;  %s332_s0 = inlined_call_operand.vmem [shape: s32[4,16], index: 0, kind: input, shape index: {}]   ;;  %s333_s1 = inlined_call_operand.vmem [shape: s32[64,1], index: 1, kind: output, shape index: {}]  }
   0x1   :  { %v5_v0 = vld [vmem:[%s332_s0] sm:$0xf]  ;;  %s176_s0 = smov 127   ;;  %s179_s10 = smov 124  }
   0x2   :  { %6 = vst [vmem:[#allocation0] sm:$0xf] %v5_v0  ;;  %s180_s11 = smov 123   ;;  %s181_s12 = smov 122  }
   0x3   :  { %s182_s13 = smov 121   ;;  %s183_s14 = smov 120  }
   0x4   :  { %s184_s19 = smov 119   ;;  %s185_s20 = smov 118  }
   0x5   :  { %s186_s21 = smov 117   ;;  %s187_s22 = smov 116  }
   0x6   :  { %s188_s23 = smov 115   ;;  %s189_s24 = smov 114  }
   0x7   :  { %s190_s25 = smov 113  }
   0x9   :  { %v11_v1 = vld [vmem:[#allocation0] sm:$0xf]  }
   0xa   :  { %v27_v2 = vld [vmem:[#allocation0] sm:$0xf]   ;;  %12 = vrot.lane.b32.xlu0 %v11_v1, %s176_s0 }
   0xb   :  { %28 = vrot.lane.b32.xlu1 %v27_v2, %s177_s8  ;;  %v19_v3 = vld [vmem:[#allocation0] sm:$0xf]  }
   0xc   :  { %v35_v4 = vld [vmem:[#allocation0] sm:$0xf]  }
   0xd   :  { %v43_v5 = vld [vmem:[#allocation0] sm:$0xf]  }
   0xe   :  { %20 = vrot.lane.b32.xlu0 %v19_v3, %s178_s9  ;;  %v51_v6 = vld [vmem:[#allocation0] sm:$0xf]  }
   0xf   :  { %36 = vrot.lane.b32.xlu1 %v35_v4, %s179_s10  ;;  %v59_v7 = vld [vmem:[#allocation0] sm:$0xf]  }
  0x10   :  { %v67_v8 = vld [vmem:[#allocation0] sm:$0xf]  }
  0x11   :  { %v75_v9 = vld [vmem:[#allocation0] sm:$0xf]  }
  0x12   :  { %44 = vrot.lane.b32.xlu0 %v43_v5, %s180_s11  ;;  %v83_v10 = vld [vmem:[#allocation0] sm:$0xf]  }
  0x13   :  { %52 = vrot.lane.b32.xlu1 %v51_v6, %s181_s12  ;;  %v7_v11 = vld [vmem:[#allocation0] sm:$0xf]  }
  0x14   :  { %9 = vst.msk [vmem:[%s333_s1] ss:$16 sm:$0x3] %vm8_vm0, %v7_v11   ;;  %10 = vst.msk [vmem:[%s333_s1] ss:$16 sm:$0xc] %vm8_vm0, %v7_v11  }
  0x15   :  { %v91_v12 = vld [vmem:[#allocation0] sm:$0xf]  }
  0x16   :  { %60 = vrot.lane.b32.xlu0 %v59_v7, %s182_s13  ;;  %v99_v13 = vld [vmem:[#allocation0] sm:$0xf]  }
  0x17   :  { %68 = vrot.lane.b32.xlu1 %v67_v8, %s183_s14  ;;  %v107_v14 = vld [vmem:[#allocation0] sm:$0xf]  }
  0x18   :  { %v115_v15 = vld [vmem:[#allocation0] sm:$0xf]  }
  0x19   :  { %v123_v16 = vld [vmem:[#allocation0] sm:$0xf]  }
  0x1a   :  { %76 = vrot.lane.b32.xlu0 %v75_v9, %s184_s19 }
  0x1b   :  { %84 = vrot.lane.b32.xlu1 %v83_v10, %s185_s20 }
  0x1e   :  { %92 = vrot.lane.b32.xlu0 %v91_v12, %s186_s21 }
  0x1f   :  { %100 = vrot.lane.b32.xlu1 %v99_v13, %s187_s22 }
  0x22   :  { %108 = vrot.lane.b32.xlu0 %v107_v14, %s188_s23 }
  0x23   :  { %116 = vrot.lane.b32.xlu1 %v115_v15, %s189_s24 }
  0x26   :  { %124 = vrot.lane.b32.xlu0 %v123_v16, %s190_s25 }
  0x7c   :  { %v13_v17 = vpop.permute.xlu0 %12  }
  0x7d   :  { %v29_v18 = vpop.permute.xlu1 %28   ;;  %131 = vst.msk [vmem:[%s333_s1 + $0x1] ss:$16 sm:$0x3] %vm8_vm0, %v13_v17   ;;  %132 = vst.msk [vmem:[%s333_s1 + $0x1] ss:$16 sm:$0xc] %vm8_vm0, %v13_v17  }
  0x7e   :  { %135 = vst.msk [vmem:[%s333_s1 + $0x3] ss:$16 sm:$0x3] %vm8_vm0, %v29_v18   ;;  %136 = vst.msk [vmem:[%s333_s1 + $0x3] ss:$16 sm:$0xc] %vm8_vm0, %v29_v18  }
  0x80   :  { %v21_v19 = vpop.permute.xlu0 %20  }
  0x81   :  { %v37_v20 = vpop.permute.xlu1 %36   ;;  %133 = vst.msk [vmem:[%s333_s1 + $0x2] ss:$16 sm:$0x3] %vm8_vm0, %v21_v19   ;;  %134 = vst.msk [vmem:[%s333_s1 + $0x2] ss:$16 sm:$0xc] %vm8_vm0, %v21_v19  }
  0x82   :  { %137 = vst.msk [vmem:[%s333_s1 + $0x4] ss:$16 sm:$0x3] %vm8_vm0, %v37_v20   ;;  %138 = vst.msk [vmem:[%s333_s1 + $0x4] ss:$16 sm:$0xc] %vm8_vm0, %v37_v20  }
  0x84   :  { %v45_v21 = vpop.permute.xlu0 %44  }
  0x85   :  { %v53_v22 = vpop.permute.xlu1 %52   ;;  %139 = vst.msk [vmem:[%s333_s1 + $0x5] ss:$16 sm:$0x3] %vm8_vm0, %v45_v21   ;;  %140 = vst.msk [vmem:[%s333_s1 + $0x5] ss:$16 sm:$0xc] %vm8_vm0, %v45_v21  }
  0x86   :  { %141 = vst.msk [vmem:[%s333_s1 + $0x6] ss:$16 sm:$0x3] %vm8_vm0, %v53_v22   ;;  %142 = vst.msk [vmem:[%s333_s1 + $0x6] ss:$16 sm:$0xc] %vm8_vm0, %v53_v22  }
  0x88   :  { %v61_v23 = vpop.permute.xlu0 %60  }
  0x89   :  { %v69_v24 = vpop.permute.xlu1 %68   ;;  %143 = vst.msk [vmem:[%s333_s1 + $0x7] ss:$16 sm:$0x3] %vm8_vm0, %v61_v23   ;;  %144 = vst.msk [vmem:[%s333_s1 + $0x7] ss:$16 sm:$0xc] %vm8_vm0, %v61_v23  }
  0x8a   :  { %145 = vst.msk [vmem:[%s333_s1 + $0x8] ss:$16 sm:$0x3] %vm8_vm0, %v69_v24   ;;  %146 = vst.msk [vmem:[%s333_s1 + $0x8] ss:$16 sm:$0xc] %vm8_vm0, %v69_v24  }
  0x8c   :  { %v77_v25 = vpop.permute.xlu0 %76  }
  0x8d   :  { %v85_v26 = vpop.permute.xlu1 %84   ;;  %147 = vst.msk [vmem:[%s333_s1 + $0x9] ss:$16 sm:$0x3] %vm8_vm0, %v77_v25   ;;  %148 = vst.msk [vmem:[%s333_s1 + $0x9] ss:$16 sm:$0xc] %vm8_vm0, %v77_v25  }
  0x8e   :  { %149 = vst.msk [vmem:[%s333_s1 + $0xa] ss:$16 sm:$0x3] %vm8_vm0, %v85_v26   ;;  %150 = vst.msk [vmem:[%s333_s1 + $0xa] ss:$16 sm:$0xc] %vm8_vm0, %v85_v26  }
  0x90   :  { %v93_v27 = vpop.permute.xlu0 %92  }
  0x91   :  { %v101_v28 = vpop.permute.xlu1 %100   ;;  %151 = vst.msk [vmem:[%s333_s1 + $0xb] ss:$16 sm:$0x3] %vm8_vm0, %v93_v27   ;;  %152 = vst.msk [vmem:[%s333_s1 + $0xb] ss:$16 sm:$0xc] %vm8_vm0, %v93_v27  }
  0x92   :  { %153 = vst.msk [vmem:[%s333_s1 + $0xc] ss:$16 sm:$0x3] %vm8_vm0, %v101_v28   ;;  %154 = vst.msk [vmem:[%s333_s1 + $0xc] ss:$16 sm:$0xc] %vm8_vm0, %v101_v28  }
  0x94   :  { %v109_v29 = vpop.permute.xlu0 %108  }
  0x95   :  { %v117_v30 = vpop.permute.xlu1 %116   ;;  %155 = vst.msk [vmem:[%s333_s1 + $0xd] ss:$16 sm:$0x3] %vm8_vm0, %v109_v29   ;;  %156 = vst.msk [vmem:[%s333_s1 + $0xd] ss:$16 sm:$0xc] %vm8_vm0, %v109_v29  }
  0x96   :  { %157 = vst.msk [vmem:[%s333_s1 + $0xe] ss:$16 sm:$0x3] %vm8_vm0, %v117_v30   ;;  %158 = vst.msk [vmem:[%s333_s1 + $0xe] ss:$16 sm:$0xc] %vm8_vm0, %v117_v30  }
  0x98   :  { %v125_v31 = vpop.permute.xlu0 %124  }
  0x99   :  { %159 = vst.msk [vmem:[%s333_s1 + $0xf] ss:$16 sm:$0x3] %vm8_vm0, %v125_v31   ;;  %160 = vst.msk [vmem:[%s333_s1 + $0xf] ss:$16 sm:$0xc] %vm8_vm0, %v125_v31  }

// kernel: forward_training.1
= control target key start
LH: loop header
LB: loop body
LE: loop exit
PB: predicated region body
PF: predicated region fallthrough
CT: control target
= control target key end

     0   :  { %16 = vsyncpa [#allocation3], 0  ;;  %s4136_s0 = inlined_call_operand.vmem [shape: f32[128,8], index: 0, kind: input, shape index: {}]   ;;  %s4137_s1 = inlined_call_operand.vmem [shape: s32[64,1], index: 1, kind: input, shape index: {}]   ;;  %s4138_s2 = inlined_call_operand.vmem [shape: bf16[8,64], index: 2, kind: input, shape index: {}]   ;;  %s4139_s3 = inlined_call_operand.vmem [shape: bf16[192,128], index: 3, kind: input, shape index: {}]   ;;  %s4140_s4 = inlined_call_operand.vmem [shape: bf16[384,128], index: 4, kind: input, shape index: {}]   ;;  %s4141_s5 = inlined_call_operand.vmem [shape: bf16[384,128], index: 5, kind: input, shape index: {}]   ;;  %s4142_s6 = inlined_call_operand.vmem [shape: bf16[384,64], index: 6, kind: input, shape index: {}]   ;;  %s4143_s7 = inlined_call_operand.hbm [shape: f32[4,1,64], index: 7, kind: input, shape index: {}]   ;;  %s4144_s8 = inlined_call_operand.hbm [shape: f32[4,1,64], index: 8, kind: input, shape index: {}]   ;;  %s4145_s9 = inlined_call_operand.vmem [shape: bf16[256,128], index: 9, kind: input, shape index: {}]   ;;  %s4146_s10 = inlined_call_operand.vmem [shape: f32[1,128], index: 10, kind: input, shape index: {}]   ;;  %s4147_s11 = inlined_call_operand.vmem [shape: f32[2,16,128], index: 11, kind: output, shape index: {}]  }
   0x1   :  { %17 = vsyncpa [#allocation5], 0  ;;  %s3258_s17 = smov 0  }
   0x2 LB: > { %s3264_s18 = sadd.s32 4294967295, %s3190_s17   ;;  %p2516_p0 = scmp.ge.s32.totalorder %s3190_s17, 1  ;;  %s3190_s17 = sphi %s3258_s17, %s23_s17  }
   0x3   : > { %p290_p1 = scmp.lt.s32.totalorder %s3190_s17, 3  ;;  %s3192_s19 = smov [#allocation2]  }
   0x4   : > { %s320_s20 = sshll.u32 %s3192_s19, 4  ;;  %p3000_p3 = scmp.eq.s32.totalorder %s3264_s18, 0  ;;  %s321_s20 = int_to_ptr.vmem [resolvable:$true] %s320_s20 }
   0x5   : > { %p3268_p2 = pnand %p2516_p0, %p290_p1  ;;  %s3193_s22 = smov [#allocation4]  }
   0x6   : > { %s333_s23 = sshll.u32 %s3193_s22, 4  ;;  %s3135_s25 = scalar_lea.vmem %s321_s20, 64  ;;  %s334_s23 = int_to_ptr.vmem [resolvable:$true] %s333_s23 }
   0x7   : > { %p2993_p4 = pneg %p3268_p2  ;;  %p3136_p7 = scmp.ne.s32.totalorder %s321_s20, %s3135_s25 }
   0x8   : > { %p3143_p10 = scmp.lt.s32.totalorder %s321_s20, %s321_s20  ;;  %p3144_p11 = scmp.lt.s32.totalorder %s3135_s25, %s3135_s25 }
   0x9   : > { %p3277_p5 = pnand %p3000_p3, %p2993_p4 }
   0xa   : > { %p3145_p12 = por %p3144_p11, %p3143_p10 }
   0xb   : > { %p3126_p6 = pneg %p3277_p5 }
   0xd   : > { %p3138_p8 = pnand %p3136_p7, %p3126_p6 }
   0xf   : > { %p3139_p9 = pneg %p3138_p8 }
  0x11   : > { %p3146_p13 = pnand %p3145_p12, %p3139_p9 }
  0x13   : > { %3149 = shalt.err (!%p3146_p13)
}
  0x14   : > { %s3194_s26 = smov 16   ;;  %s3195_s27 = smov 1  }
  0x15   : > { %2996 = dma.hbm_to_vmem [thread:$0]  (!%p3277_p5), %s4143_s7, 64, %s321_s20, [#allocation3], %s3194_s26, %s3194_s26, %s3195_s27  }
  0x16   : > { %s3161_s30 = scalar_lea.vmem %s334_s23, 64  ;;  %p3169_p7 = scmp.lt.s32.totalorder %s334_s23, %s334_s23 }
  0x17   : > { %p3162_p0 = scmp.ne.s32.totalorder %s334_s23, %s3161_s30  ;;  %p3170_p8 = scmp.lt.s32.totalorder %s3161_s30, %s3161_s30 }
  0x19   : > { %p3164_p1 = pnand %p3162_p0, %p3126_p6  ;;  %p3171_p10 = por %p3170_p8, %p3169_p7 }
  0x1b   : > { %p3165_p4 = pneg %p3164_p1 }
  0x1d   : > { %p3172_p9 = pnand %p3171_p10, %p3165_p4 }
  0x1f   : > { %3175 = shalt.err (!%p3172_p9)
}
  0x20   : > { %2999 = dma.hbm_to_vmem [thread:$0]  (!%p3277_p5), %s4144_s8, 64, %s334_s23, [#allocation5], %s3194_s26, %s3194_s26, %s3195_s27  }
  0x21   : > { %364 = sbr.rel (%p3268_p2) target bundleno = 1960 (0x7a8), region = 64 }
  0x26   : > { %3181 = dma.done.wait (%p3000_p3), [#allocation3], 64  }
  0x27   : > { %3183 = vsyncadd (%p3000_p3), [#allocation3], 4294967232 }
  0x28   : > { %3185 = dma.done.wait (%p3000_p3), [#allocation5], 64  }
  0x29   : > { %3187 = vsyncadd (%p3000_p3), [#allocation5], 4294967232  ;;  %s2523_s14 = sshll.u32 %s3264_s18, 3  ;;  %v3196_v0 = vmov 0   ;;  %vm470_vm0 = vcmask 1043456   ;;  %vm457_vm1 = vcmask 64512   ;;  %v555_v50 = vlaneseq }
  0x2a   : > { %p409_p6 = scmp.lt.s32.totalorder %s2523_s14, 15  ;;  %3018 = vset.pattern.permute.xlu0 %v3196_v0  ;;  %3019 = vset.pattern.permute.xlu1 %v3196_v0  ;;  %v456_v1 = vld [vmem:[%s4138_s2] sm:$0xf]  ;;  %v421_v16 = vld [vmem:[%s4137_s1 + $0x8] sm:$0xff]  ;;  %v422_v17 = vld [vmem:[%s4137_s1 + $0x10] sm:$0xff]  ;;  %s3197_s29 = smov 64  }
  0x2b   : > { %828 = vmatprep.subr.bf16.mxu1 %v3196_v0  ;;  %2984 = vmatprep.subr.msk.bf16.mxu0 %vm470_vm0, %v456_v1  ;;  %v472_v4 = vsel %vm470_vm0, %v456_v1, 0  ;;  %v420_v15 = vld [vmem:[%s4137_s1] sm:$0xff]  ;;  %vm429_vm4 = vcmp.ge.s32.totalorder %v421_v16, 1  ;;  %vm437_vm5 = vcmp.lt.s32.totalorder %v421_v16, 15  ;;  %v423_v18 = vld [vmem:[%s4137_s1 + $0x18] sm:$0xff]  ;;  %v425_v24 = vld [vmem:[%s4137_s1 + $0x28] sm:$0xff] }
  0x2c   : > { %s4177_s14 = smov (!%p409_p6, %s2523_s14), 15  ;;  %2903 = vmatpush3.bf16.msra.mxu0 %v472_v4  ;;  %vm428_vm2 = vcmp.ge.s32.totalorder %v420_v15, 1  ;;  %vm436_vm3 = vcmp.lt.s32.totalorder %v420_v15, 15  ;;  %v567_v21 = vsel %vm429_vm4, 1, %v3196_v0  ;;  %v632_v22 = vsel %vm437_vm5, 1, %v3196_v0  ;;  %v424_v23 = vld [vmem:[%s4137_s1 + $0x20] sm:$0xff] }
  0x2d   : > { %s2524_s15 = sshll.u32 %s4177_s14, 3  ;;  %v566_v19 = vsel %vm428_vm2, 1, %v3196_v0  ;;  %v631_v20 = vsel %vm436_vm3, 1, %v3196_v0  ;;  %vm430_vm6 = vcmp.ge.s32.totalorder %v422_v17, 1  ;;  %vm431_vm7 = vcmp.ge.s32.totalorder %v423_v18, 1  ;;  %v3020_v33 = vld [vmem:[%s4139_s3 + $0x38] sm:$0xff]  }
  0x2e   : > { %s412_s20 = scalar_lea.vmem %s4136_s0, %s2524_s15  ;;  %575 = vperm.xlu0 %3018, %v566_v19   ;;  %vm438_vm8 = vcmp.lt.s32.totalorder %v422_v17, 15  ;;  %vm439_vm9 = vcmp.lt.s32.totalorder %v423_v18, 15  ;;  %640 = vperm.xlu1 %3019, %v631_v20   ;;  %v568_v25 = vsel %vm430_vm6, 1, %v3196_v0  ;;  %v569_v26 = vsel %vm431_vm7, 1, %v3196_v0  ;;  %v3021_v34 = vld [vmem:[%s4139_s3 + $0x30] sm:$0xff]   ;;  %v3022_v35 = vld [vmem:[%s4139_s3 + $0x28] sm:$0xff]  }
  0x2f   : > { %v444_v2 = vld [vmem:[%s412_s20] sm:$0xff]  ;;  %v445_v3 = vld [vmem:[%s412_s20 + $0x8] sm:$0xff]  ;;  %v446_v6 = vld [vmem:[%s412_s20 + $0x10] sm:$0xff]  ;;  %v633_v27 = vsel %vm438_vm8, 1, %v3196_v0  ;;  %v634_v28 = vsel %vm439_vm9, 1, %v3196_v0  ;;  %vm432_vm10 = vcmp.ge.s32.totalorder %v424_v23, 1  ;;  %829 = vmatpush1.bf16.msra.mxu1 %v3020_v33 }
  0x30   : > { %v452_v5 = vpack.c.bf16 %v445_v3, %v444_v2  ;;  %v447_v7 = vld [vmem:[%s412_s20 + $0x18] sm:$0xff]  ;;  %v448_v8 = vld [vmem:[%s412_s20 + $0x20] sm:$0xff]  ;;  %v449_v10 = vld [vmem:[%s412_s20 + $0x28] sm:$0xff]  ;;  %vm433_vm11 = vcmp.ge.s32.totalorder %v425_v24, 1  ;;  %vm440_vm12 = vcmp.lt.s32.totalorder %v424_v23, 15  ;;  %vm441_vm13 = vcmp.lt.s32.totalorder %v425_v24, 15  ;;  %830 = vmatprep.subr.bf16.mxu1 %v3196_v0 }
  0x31   : > { %v453_v9 = vpack.c.bf16 %v447_v7, %v446_v6  ;;  %v450_v11 = vld [vmem:[%s412_s20 + $0x30] sm:$0xff]  ;;  %v451_v12 = vld [vmem:[%s412_s20 + $0x38] sm:$0xff]  ;;  %v454_v13 = vpack.c.bf16 %v449_v10, %v448_v8  ;;  %v570_v29 = vsel %vm432_vm10, 1, %v3196_v0  ;;  %v571_v30 = vsel %vm433_vm11, 1, %v3196_v0  ;;  %v3023_v36 = vld [vmem:[%s4139_s3 + $0x20] sm:$0xff]   ;;  %p414_p2 = scmp.lt.s32.totalorder %s3264_s18, 1 }
  0x32   : > { %2904 = vmatprep.mubr.msk.bf16.mxu0 %vm457_vm1, %v452_v5  ;;  %v455_v14 = vpack.c.bf16 %v451_v12, %v450_v11  ;;  %v635_v31 = vsel %vm440_vm12, 1, %v3196_v0  ;;  %v636_v32 = vsel %vm441_vm13, 1, %v3196_v0  ;;  %578 = vperm.xlu0 %3018, %v567_v21   ;;  %v3024_v37 = vld [vmem:[%s4139_s3 + $0x18] sm:$0xff]   ;;  %v3025_v38 = vld [vmem:[%s4139_s3 + $0x10] sm:$0xff]   ;;  %v3026_v39 = vld [vmem:[%s4139_s3 + $0x8] sm:$0xff]   ;;  %v3422_v56 = vshrl.u32 %v555_v50, 7 }
  0x33   : > { %2905 = vmatmul.mubr.msk.bf16.vlgmr.msra.gmra.mxu0 %vm457_vm1, %v453_v9  ;;  %643 = vperm.xlu1 %3019, %v632_v22   ;;  %v3027_v40 = vld [vmem:[%s4139_s3] sm:$0xff]   ;;  %v3028_v41 = vld [vmem:[%s4139_s3 + $0x58] sm:$0xff]   ;;  %v3029_v42 = vld [vmem:[%s4139_s3 + $0x50] sm:$0xff]   ;;  %vm703_vm7 = vcmask 523264   ;;  %s4179_s18 = smov (!%p414_p2, %s3264_s18), 1 }
  0x34   : > { %2908 = vmatprep.mubr.msk.bf16.mxu0 %vm457_vm1, %v454_v13  ;;  %831 = vmatpush1.bf16.msra.mxu1 %v3021_v34  ;;  %v3030_v43 = vld [vmem:[%s4139_s3 + $0x48] sm:$0xff]   ;;  %v3031_v51 = vld [vmem:[%s4139_s3 + $0x40] sm:$0xff]   ;;  %v427_v54 = vld [vmem:[%s4137_s1 + $0x38] sm:$0xff]  ;;  %vm557_vm2 = vcmp.lt.s32.totalorder %v3422_v56, 1  ;;  %vm622_vm3 = vcmp.lt.s32.totalorder %v3422_v56, 7  ;;  %s2718_s30 = sshll.u32 %s4179_s18, 4 }
  0x35   : > { %832 = vmatprep.subr.bf16.mxu1 %v3196_v0  ;;  %v426_v55 = vld [vmem:[%s4137_s1 + $0x30] sm:$0xff]  ;;  %vm435_vm14 = vcmp.ge.s32.totalorder %v427_v54, 1  ;;  %vm443_vm0 = vcmp.lt.s32.totalorder %v427_v54, 15  ;;  %s418_s15 = scalar_lea.vmem %s4147_s11, %s2718_s30 }
  0x36   : > { %581 = vperm.xlu0 %3018, %v568_v25   ;;  %vm434_vm15 = vcmp.ge.s32.totalorder %v426_v55, 1  ;;  %v573_v63 = vsel %vm435_vm14, 1, %v3196_v0  ;;  %v3435_v2 = vsel %vm443_vm0, 1, %v3196_v0 }
  0x37   : > { %584 = vperm.xlu1 %3019, %v569_v26   ;;  %v3432_v1 = vsel %vm434_vm15, 1, %v3196_v0 }
  0x38   : > { %833 = vmatpush1.bf16.msra.mxu1 %v3022_v35 }
  0x39   : > { %834 = vmatprep.subr.bf16.mxu1 %v3196_v0 }
  0x3a   : > { %646 = vperm.xlu0 %3018, %v633_v27  }
  0x3b   : > { %2909 = vmatmul.mubr.msk.bf16.gmra.mxu0 %vm457_vm1, %v455_v14  ;;  %649 = vperm.xlu1 %3019, %v634_v28   ;;  %vm442_vm1 = vcmp.lt.s32.totalorder %v426_v55, 15 }
  0x3c   : > { %835 = vmatpush1.bf16.msra.mxu1 %v3023_v36  ;;  %v3438_v3 = vsel %vm442_vm1, 1, %v3196_v0 }
  0x3d   : > { %836 = vmatprep.subr.bf16.mxu1 %v3196_v0 }
  0x3e   : > { %590 = vperm.xlu0 %3018, %v571_v30  }
  0x3f   : > { %587 = vperm.xlu1 %3019, %v570_v29  }
  0x40   : > { %837 = vmatpush1.bf16.msra.mxu1 %v3024_v37 }
  0x41   : > { %838 = vmatprep.subr.bf16.mxu1 %v3196_v0 }
  0x42   : > { %655 = vperm.xlu0 %3018, %v636_v32  }
  0x43   : > { %652 = vperm.xlu1 %3019, %v635_v31  }
  0x44   : > { %839 = vmatpush1.bf16.msra.mxu1 %v3025_v38 }
  0x45   : > { %840 = vmatprep.subr.bf16.mxu1 %v3196_v0 }
  0x48   : > { %841 = vmatpush1.bf16.msra.mxu1 %v3026_v39 }
  0x49   : > { %842 = vmatprep.subr.bf16.mxu1 %v3196_v0 }
  0x4c   : > { %843 = vmatpush1.bf16.msra.mxu1 %v3027_v40 }
  0x4d   : > { %852 = vmatprep.subr.bf16.mxu1 %v3196_v0 }
  0x50   : > { %853 = vmatpush2.bf16.msra.mxu1 %v3028_v41 }
  0x51   : > { %854 = vmatprep.subr.bf16.mxu1 %v3196_v0 }
  0x54   : > { %855 = vmatpush2.bf16.msra.mxu1 %v3029_v42 }
  0x55   : > { %856 = vmatprep.subr.bf16.mxu1 %v3196_v0 }
  0x58   : > { %857 = vmatpush2.bf16.msra.mxu1 %v3030_v43 }
  0x59   : > { %858 = vmatprep.subr.bf16.mxu1 %v3196_v0 }
  0x5c   : > { %859 = vmatpush2.bf16.msra.mxu1 %v3031_v51 }
  0xa9   : > { %v3397_v44 = vpop.permute.xlu1 %640  ;;  %v3399_v45 = vpop.permute.xlu0 %575 }
  0xaa   : > { %vm663_vm4 = vcmp.eq.s32.totalorder %v3397_v44, 1  ;;  %vm598_vm10 = vcmp.eq.s32.totalorder %v3399_v45, 1  ;;  %v3050_v45 = vld [vmem:[%s4140_s4 + $0xa8] sm:$0xff]  }
  0xad   : > { %v3403_v47 = vpop.permute.xlu0 %578 }
  0xae   : > { %v3401_v46 = vpop.permute.xlu1 %643  ;;  %vm599_vm5 = vcmp.eq.s32.totalorder %v3403_v47, 1 }
  0xaf   : > { %vm4152_vm6 = vcmp.eq.s32.totalorder %v3401_v46, 1 }
  0xb1   : > { %v3407_v49 = vpop.permute.xlu0 %581 }
  0xb2   : > { %v3405_v48 = vpop.permute.xlu1 %584  ;;  %vm600_vm8 = vcmp.eq.s32.totalorder %v3407_v49, 1 }
  0xb3   : > { %vm601_vm9 = vcmp.eq.s32.totalorder %v3405_v48, 1 }
  0xb5   : > { %v3414_v53 = vpop.permute.xlu0 %646 }
  0xb6   : > { %v3412_v52 = vpop.permute.xlu1 %649  ;;  %vm4151_vm11 = vcmp.eq.s32.totalorder %v3414_v53, 1 }
  0xb7   : > { %vm4150_vm12 = vcmp.eq.s32.totalorder %v3412_v52, 1 }
  0xb9   : > { %v3424_v58 = vpop.permute.xlu0 %590 }
  0xba   : > { %v3426_v61 = vpop.permute.xlu1 %587  ;;  %vm603_vm14 = vcmp.eq.s32.totalorder %v3424_v58, 1  ;;  %v3054_v58 = vld [vmem:[%s4140_s4 + $0x88] sm:$0xff]  }
  0xbb   : > { %vm602_vm13 = vcmp.eq.s32.totalorder %v3426_v61, 1 }
  0xbd   : > { %v3443_v5 = vpop.permute.xlu0 %655 }
  0xbe   : > { %v3449_v0 = vpop.permute.xlu1 %652  ;;  %vm4148_vm0 = vcmp.eq.s32.totalorder %v3443_v5, 1 }
  0xbf   : > { %vm4149_vm15 = vcmp.eq.s32.totalorder %v3449_v0, 1 }
  0xf3   : > { %v2906_v57 = vpop.f32.mrf.mxu0 }
  0xf4   : > { %v541_v59 = vmax.f32 %v2906_v57, 0.0 }
  0xf5   : > { %v508_v60 = vpop.f32.mrf.mxu0 }
  0xf6   : > { %v549_v6 = vrot.slane %v541_v59, 7  ;;  %v3445_v7 = vmax.f32 %v508_v60, 0.0  ;;  %v616_v13 = vrot.slane %v541_v59, 1 }
  0xf7   : > { %v2907_v62 = vpop.f32.mrf.mxu0 }
  0xf8   : > { %v542_v4 = vmax.f32 %v2907_v62, 0.0  ;;  %v547_v19 = vrot.slane %v3445_v7, 7  ;;  %v614_v20 = vrot.slane %v3445_v7, 1 }
  0xf9   : > { %v511_v8 = vpop.f32.mrf.mxu0 }
  0xfa   : > { %v550_v9 = vrot.slane %v542_v4, 7  ;;  %v617_v10 = vrot.slane %v542_v4, 1  ;;  %v540_v11 = vmax.f32 %v511_v8, 0.0  ;;  %v684_v12 = vpack.c.bf16 %v542_v4, %v541_v59 }
  0xfb   : > { %v2910_v14 = vpop.f32.mrf.mxu0 }
  0xfc   : > { %v548_v15 = vrot.slane %v540_v11, 7  ;;  %v615_v16 = vrot.slane %v540_v11, 1  ;;  %v562_v17 = vsel %vm557_vm2, %v549_v6, %v550_v9  ;;  %v3457_v18 = vmax.f32 %v2910_v14, 0.0  ;;  %697 = vrot.lane.b32.xlu1 %v684_v12, %s3197_s29 }
  0xfd   : > { %v627_v21 = vsel %vm622_vm3, %v616_v13, %v617_v10  ;;  %v524_v22 = vpop.f32.mrf.mxu0  ;;  %v683_v23 = vpack.c.bf16 %v540_v11, %v3445_v7  ;;  %v609_v25 = vsel %vm601_vm9, %v562_v17, 0.0 }
  0xfe   : > { %v563_v24 = vsel %vm557_vm2, %v548_v15, %v549_v6  ;;  %v553_v26 = vrot.slane %v3457_v18, 7  ;;  %v620_v27 = vrot.slane %v3457_v18, 1  ;;  %v543_v29 = vmax.f32 %v524_v22, 0.0 }
  0xff   : > { %v608_v28 = vsel %vm600_vm8, %v563_v24, 0.0  ;;  %695 = vrot.lane.b32.xlu0 %v683_v23, %s3197_s29  ;;  %v2911_v30 = vpop.f32.mrf.mxu0  ;;  %v628_v31 = vsel %vm622_vm3, %v615_v16, %v616_v13  ;;  %v629_v32 = vsel %vm622_vm3, %v614_v20, %v615_v16  ;;  %v564_v41 = vsel %vm557_vm2, %v547_v19, %v548_v15 }
 0x100   : > { %v680_v33 = vpack.c.bf16 %v609_v25, %v608_v28  ;;  %v546_v34 = vmax.f32 %v2911_v30, 0.0  ;;  %596 = vperm.xlu1 %3019, %v573_v63   ;;  %v671_v35 = vsel %vm663_vm4, %v629_v32, 0.0  ;;  %v672_v36 = vsel %vm4152_vm6, %v628_v31, 0.0 }
 0x101   : > { %v551_v37 = vrot.slane %v543_v29, 7  ;;  %v618_v38 = vrot.slane %v543_v29, 1  ;;  %v527_v39 = vpop.f32.mrf.mxu0  ;;  %v687_v40 = vpack.c.bf16 %v672_v36, %v671_v35  ;;  %v673_v42 = vsel %vm4151_vm11, %v627_v21, 0.0 }
 0x102   : > { %v554_v43 = vrot.slane %v546_v34, 7  ;;  %v621_v50 = vrot.slane %v546_v34, 1  ;;  %v544_v51 = vmax.f32 %v527_v39, 0.0  ;;  %v686_v57 = vpack.c.bf16 %v546_v34, %v3457_v18 }
 0x103   : > { %v626_v54 = vsel %vm622_vm3, %v617_v10, %v618_v38  ;;  %v561_v55 = vsel %vm557_vm2, %v550_v9, %v551_v37  ;;  %2543 = vmatprep.mubr.msk.bf16.mxu1 %vm703_vm7, %v687_v40  ;;  %593 = vperm.xlu0 %3018, %v3432_v1   ;;  %v607_v59 = vsel %vm599_vm5, %v564_v41, 0.0  ;;  %v3032_v40 = vld [vmem:[%s4140_s4 + $0x78] sm:$0xff]  }
 0x104   : > { %v674_v60 = vsel %vm4150_vm12, %v626_v54, 0.0  ;;  %v552_v62 = vrot.slane %v544_v51, 7  ;;  %v619_v63 = vrot.slane %v544_v51, 1  ;;  %v610_v4 = vsel %vm602_vm13, %v561_v55, 0.0  ;;  %661 = vperm.xlu1 %3019, %v3435_v2   ;;  %v3033_v41 = vld [vmem:[%s4140_s4 + $0x38] sm:$0xff]   ;;  %2724 = vmatprep.subr.bf16.mxu0 %v3032_v40  ;;  %v3038_v54 = vld [vmem:[%s4140_s4 + $0x60] sm:$0xff]  }
 0x105   : > { %v688_v6 = vpack.c.bf16 %v674_v60, %v673_v42  ;;  %v685_v7 = vpack.c.bf16 %v544_v51, %v543_v29  ;;  %v565_v1 = vsel %vm557_vm2, %v554_v43, %v547_v19  ;;  %v558_v8 = vsel %vm557_vm2, %v553_v26, %v554_v43  ;;  %2725 = vmatpush3.bf16.msra.mxu0 %v3033_v41  ;;  %v3034_v42 = vld [vmem:[%s4140_s4 + $0x70] sm:$0xff]   ;;  %v3037_v51 = vld [vmem:[%s4140_s4 + $0x28] sm:$0xff]   ;;  %v3039_v55 = vld [vmem:[%s4140_s4 + $0x20] sm:$0xff]  }
 0x106   : > { %v560_v9 = vsel %vm557_vm2, %v551_v37, %v552_v62  ;;  %v625_v10 = vsel %vm622_vm3, %v618_v38, %v619_v63  ;;  %v624_v11 = vsel %vm622_vm3, %v619_v63, %v620_v27  ;;  %v606_v2 = vsel %vm598_vm10, %v565_v1, 0.0  ;;  %v3035_v43 = vld [vmem:[%s4140_s4 + $0x30] sm:$0xff]   ;;  %2726 = vmatprep.subr.bf16.mxu0 %v3034_v42  ;;  %v3044_v63 = vld [vmem:[%s4140_s4 + $0x48] sm:$0xff]   ;;  %v3048_v1 = vld [vmem:[%s4140_s4 + $0xb8] sm:$0xff]  }
 0x107   : > { %v611_v12 = vsel %vm603_vm14, %v560_v9, 0.0  ;;  %658 = vperm.xlu0 %3018, %v3438_v3   ;;  %v675_v13 = vsel %vm4149_vm15, %v625_v10, 0.0  ;;  %v676_v14 = vsel %vm4148_vm0, %v624_v11, 0.0  ;;  %v679_v15 = vpack.c.bf16 %v607_v59, %v606_v2  ;;  %v3041_v59 = vld [vmem:[%s4140_s4 + $0x18] sm:$0xff]   ;;  %v3042_v60 = vld [vmem:[%s4140_s4 + $0x50] sm:$0xff]  }
 0x108   : > { %v681_v16 = vpack.c.bf16 %v611_v12, %v610_v4  ;;  %v689_v17 = vpack.c.bf16 %v676_v14, %v675_v13  ;;  %701 = vrot.lane.b32.xlu1 %v686_v57, %s3197_s29  ;;  %v559_v18 = vsel %vm557_vm2, %v552_v62, %v553_v26  ;;  %v630_v19 = vsel %vm622_vm3, %v621_v50, %v614_v20  ;;  %v3040_v57 = vld [vmem:[%s4140_s4 + $0x58] sm:$0xff]   ;;  %v3043_v62 = vld [vmem:[%s4140_s4 + $0x10] sm:$0xff]   ;;  %v3045_v4 = vld [vmem:[%s4140_s4 + $0x8] sm:$0xff]  }
 0x109   : > { %v623_v3 = vsel %vm622_vm3, %v620_v27, %v621_v50  ;;  %2727 = vmatpush3.bf16.msra.mxu0 %v3035_v43  ;;  %v3036_v50 = vld [vmem:[%s4140_s4 + $0x68] sm:$0xff]  }
 0x10a   : > { %2728 = vmatprep.subr.bf16.mxu0 %v3036_v50 }
 0x10b   : > { %699 = vrot.lane.b32.xlu0 %v685_v7, %s3197_s29  ;;  %v3047_v7 = vld [vmem:[%s4140_s4] sm:$0xff]  }
 0x10d   : > { %2729 = vmatpush3.bf16.msra.mxu0 %v3037_v51  ;;  %v3051_v51 = vld [vmem:[%s4140_s4 + $0xa0] sm:$0xff]  }
 0x10e   : > { %2730 = vmatprep.subr.bf16.mxu0 %v3038_v54 }
 0x111   : > { %2731 = vmatpush3.bf16.msra.mxu0 %v3039_v55 }
 0x112   : > { %2732 = vmatprep.subr.bf16.mxu0 %v3040_v57 }
 0x115   : > { %2733 = vmatpush3.bf16.msra.mxu0 %v3041_v59 }
 0x116   : > { %2734 = vmatprep.subr.bf16.mxu0 %v3042_v60  ;;  %v3052_v60 = vld [vmem:[%s4140_s4 + $0x98] sm:$0xff]  }
 0x119   : > { %2735 = vmatpush3.bf16.msra.mxu0 %v3043_v62 }
 0x11a   : > { %2736 = vmatprep.subr.bf16.mxu0 %v3044_v63 }
 0x11d   : > { %2737 = vmatpush3.bf16.msra.mxu0 %v3045_v4  ;;  %v3053_v4 = vld [vmem:[%s4140_s4 + $0x90] sm:$0xff]  }
 0x16e   : > { %v698_v23 = vpop.permute.xlu1 %697 }
 0x16f   : > { %v710_v24 = vsel %vm703_vm7, %v680_v33, %v698_v23 }
 0x171   : > { %v696_v21 = vpop.permute.xlu0 %695 }
 0x172   : > { %v706_v22 = vsel %vm703_vm7, %v679_v15, %v696_v21 }
 0x173   : > { %861 = vmatmul.mubr.bf16.vlgmr.msra.gmra.mxu1 %v706_v22 }
 0x174   : > { %2544 = vmatprep.mubr.msk.bf16.mxu1 %vm703_vm7, %v688_v6  ;;  %v3046_v6 = vld [vmem:[%s4140_s4 + $0x40] sm:$0xff]  }
 0x175   : > { %2738 = vmatprep.subr.bf16.mxu0 %v3046_v6 }
 0x176   : > { %2739 = vmatpush3.bf16.msra.mxu0 %v3047_v7 }
 0x177   : > { %2912 = vmatprep.subr.bf16.mxu0 %v3048_v1 }
 0x17b   : > { %869 = vmatmul.mubr.bf16.gmra.mxu1 %v710_v24  ;;  %v597_v25 = vpop.permute.xlu1 %596 }
 0x17c   : > { %2545 = vmatprep.mubr.msk.bf16.mxu1 %vm703_vm7, %v689_v17  ;;  %vm605_vm1 = vcmp.eq.s32.totalorder %v597_v25, 1 }
 0x17d   : > { %v613_v27 = vsel %vm605_vm1, %v558_v8, 0.0 }
 0x17e   : > { %v594_v20 = vpop.permute.xlu0 %593 }
 0x17f   : > { %vm604_vm0 = vcmp.eq.s32.totalorder %v594_v20, 1  ;;  %v662_v26 = vpop.permute.xlu1 %661 }
 0x180   : > { %v612_v28 = vsel %vm604_vm0, %v559_v18, 0.0  ;;  %vm3534_vm15 = vmpackc.low %vm605_vm1, %vm604_vm0  ;;  %vm670_vm12 = vcmp.eq.s32.totalorder %v662_v26, 1  ;;  %vm4173_vm0 = vcmp.eq.s32.totalorder %v3443_v5, 1  ;;  %v3056_v5 = vld [vmem:[%s4141_s5 + $0xb8] sm:$0xff]  }
 0x181   : > { %v682_v30 = vpack.c.bf16 %v613_v27, %v612_v28  ;;  %v678_v32 = vsel %vm670_vm12, %v630_v19, 0.0 }
 0x182   : > { %v659_v31 = vpop.permute.xlu0 %658 }
 0x183   : > { %vm669_vm11 = vcmp.eq.s32.totalorder %v659_v31, 1  ;;  %v702_v38 = vpop.permute.xlu1 %701 }
 0x184   : > { %v677_v33 = vsel %vm669_vm11, %v623_v3, 0.0  ;;  %vm3538_vm6 = vmpackc.low %vm670_vm12, %vm669_vm11  ;;  %v718_v39 = vsel %vm703_vm7, %v682_v30, %v702_v38  ;;  %vm4169_vm12 = vcmp.eq.s32.totalorder %v3412_v52, 1 }
 0x185   : > { %v690_v35 = vpack.c.bf16 %v678_v32, %v677_v33  ;;  %vm3622_vm11 = vmpackc.low %vm599_vm5, %vm598_vm10 }
 0x186   : > { %v700_v36 = vpop.permute.xlu0 %699  ;;  %vm3646_vm5 = vmpackc.low %vm601_vm9, %vm600_vm8  ;;  %vm4165_vm9 = vcmp.eq.s32.totalorder %v3401_v46, 1 }
 0x187   : > { %v714_v37 = vsel %vm703_vm7, %v681_v16, %v700_v36  ;;  %v3049_v36 = vld [vmem:[%s4140_s4 + $0xb0] sm:$0xff]   ;;  %vm3666_vm8 = vmpackc.low %vm603_vm14, %vm602_vm13  ;;  %vm4172_vm14 = vcmp.eq.s32.totalorder %v3449_v0, 1  ;;  %v3057_v0 = vld [vmem:[%s4141_s5 + $0x78] sm:$0xff]  }
 0x188   : > { %877 = vmatmul.mubr.bf16.gmra.mxu1 %v714_v37  ;;  %vm3694_vm10 = vmpackc.low %vm4165_vm9, %vm663_vm4  ;;  %vm4168_vm4 = vcmp.eq.s32.totalorder %v3414_v53, 1  ;;  %2776 = vmatprep.subr.bf16.mxu1 %v3057_v0 }
 0x189   : > { %2546 = vmatprep.mubr.msk.bf16.mxu1 %vm703_vm7, %v690_v35  ;;  %vm3715_vm13 = vmpackc.low %vm4169_vm12, %vm4168_vm4 }
 0x18a   : > { %vm3724_vm1 = vmpackc.low %vm4173_vm0, %vm4172_vm14 }
 0x190   : > { %885 = vmatmul.mubr.bf16.gmra.mxu1 %v718_v39 }
 0x233   : > { %v862_v8 = vpop.f32.mrf.mxu1 }
 0x234   : > { %v3596_v11 = vmax.f32 %v862_v8, 0.0 }
 0x235   : > { %v864_v9 = vpop.f32.mrf.mxu1 }
 0x236   : > { %v901_v27 = vrot.slane %v3596_v11, 7 }
 0x237   : > { %v865_v10 = vpop.f32.mrf.mxu1 }
 0x238   : > { %v3598_v2 = vmax.f32 %v865_v10, 0.0  ;;  %v925_v10 = vrot.slane %v3596_v11, 1 }
 0x239   : > { %v867_v12 = vpop.f32.mrf.mxu1 }
 0x23a   : > { %v953_v13 = vpack.c.bf16 %v3598_v2, %v3596_v11  ;;  %v902_v25 = vrot.slane %v3598_v2, 7  ;;  %v926_v9 = vrot.slane %v3598_v2, 1 }
 0x23b   : > { %v870_v14 = vpop.f32.mrf.mxu1 }
 0x23c   : > { %1185 = vmatprep.mubr.bf16.mxu0 %v953_v13  ;;  %v915_v31 = vsel %vm557_vm2, %v901_v27, %v902_v25  ;;  %v3611_v32 = vmax.f32 %v870_v14, 0.0  ;;  %v939_v2 = vsel %vm622_vm3, %v925_v10, %v926_v9 }
 0x23d   : > { %v872_v15 = vpop.f32.mrf.mxu1 }
 0x23e   : > { %v903_v40 = vrot.slane %v3611_v32, 7  ;;  %v3055_v15 = vld [vmem:[%s4140_s4 + $0x80] sm:$0xff]  }
 0x23f   : > { %v873_v16 = vpop.f32.mrf.mxu1 }
 0x240   : > { %v3606_v28 = vmax.f32 %v873_v16, 0.0  ;;  %v914_v43 = vsel %vm557_vm2, %v902_v25, %v903_v40 }
 0x241   : > { %v875_v17 = vpop.f32.mrf.mxu1 }
 0x242   : > { %v904_v38 = vrot.slane %v3606_v28, 7  ;;  %v954_v39 = vpack.c.bf16 %v3606_v28, %v3611_v32 }
 0x244   : > { %v913_v41 = vsel %vm557_vm2, %v903_v40, %v904_v38  ;;  %v3067_v40 = vld [vmem:[%s4141_s5 + $0x20] sm:$0xff]  }
 0x245   : > { %v2575_v50 = vpack.c.bf16 %v913_v41, %v914_v43  ;;  %v3070_v41 = vld [vmem:[%s4141_s5 + $0x18] sm:$0xff]   ;;  %v3072_v43 = vld [vmem:[%s4141_s5 + $0x50] sm:$0xff]  }
 0x248   : > { %v878_v18 = vpop.f32.mrf.mxu1 }
 0x249   : > { %v897_v42 = vmax.f32 %v878_v18, 0.0 }
 0x24a   : > { %v880_v19 = vpop.f32.mrf.mxu1 }
 0x24b   : > { %v905_v59 = vrot.slane %v897_v42, 7  ;;  %v929_v16 = vrot.slane %v897_v42, 1  ;;  %v928_v19 = vrot.slane %v3606_v28, 1  ;;  %v3058_v28 = vld [vmem:[%s4141_s5 + $0x38] sm:$0xff]  }
 0x24c   : > { %v881_v3 = vpop.f32.mrf.mxu1  ;;  %2777 = vmatpush3.bf16.msra.mxu1 %v3058_v28 }
 0x24d   : > { %v898_v47 = vmax.f32 %v881_v3, 0.0  ;;  %v912_v62 = vsel %vm557_vm2, %v904_v38, %v905_v59  ;;  %v936_v44 = vsel %vm622_vm3, %v928_v19, %v929_v16  ;;  %v3065_v38 = vld [vmem:[%s4141_s5 + $0xa0] sm:$0xff]  }
 0x24e   : > { %v883_v21 = vpop.f32.mrf.mxu1 }
 0x24f   : > { %v906_v55 = vrot.slane %v898_v47, 7  ;;  %v955_v57 = vpack.c.bf16 %v898_v47, %v897_v42  ;;  %v930_v3 = vrot.slane %v898_v47, 1  ;;  %v3069_v47 = vld [vmem:[%s4141_s5 + $0x58] sm:$0xff]   ;;  %v3071_v42 = vld [vmem:[%s4141_s5 + $0x90] sm:$0xff]  }
 0x250   : > { %v886_v22 = vpop.f32.mrf.mxu1 }
 0x251   : > { %v911_v48 = vsel %vm557_vm2, %v905_v59, %v906_v55  ;;  %v899_v49 = vmax.f32 %v886_v22, 0.0  ;;  %v3077_v59 = vld [vmem:[%s4141_s5 + $0x80] sm:$0xff]  }
 0x252   : > { %v888_v23 = vpop.f32.mrf.mxu1  ;;  %v2578_v63 = vpack.c.bf16 %v911_v48, %v912_v62  ;;  %v3079_v48 = vld [vmem:[%s4141_s5] sm:$0xff]  }
 0x253   : > { %v907_v8 = vrot.slane %v899_v49, 7  ;;  %v931_v18 = vrot.slane %v899_v49, 1  ;;  %v935_v23 = vsel %vm622_vm3, %v929_v16, %v930_v3 }
 0x254   : > { %v889_v24 = vpop.f32.mrf.mxu1 }
 0x255   : > { %v3603_v20 = vmax.f32 %v889_v24, 0.0  ;;  %v910_v13 = vsel %vm557_vm2, %v906_v55, %v907_v8  ;;  %v934_v46 = vsel %vm622_vm3, %v930_v3, %v931_v18  ;;  %v3075_v55 = vld [vmem:[%s4141_s5 + $0x48] sm:$0xff]  }
 0x256   : > { %v891_v26 = vpop.f32.mrf.mxu1 }
 0x257   : > { %v908_v30 = vrot.slane %v3603_v20, 7  ;;  %v956_v7 = vpack.c.bf16 %v3603_v20, %v899_v49  ;;  %v932_v25 = vrot.slane %v3603_v20, 1  ;;  %v2590_v26 = vpack.c.bf16 %v934_v46, %v935_v23 }
 0x259   : > { %v916_v33 = vsel %vm557_vm2, %v908_v30, %v901_v27  ;;  %v909_v61 = vsel %vm557_vm2, %v907_v8, %v908_v30  ;;  %v933_v52 = vsel %vm622_vm3, %v931_v18, %v932_v25  ;;  %v940_v53 = vsel %vm622_vm3, %v932_v25, %v925_v10  ;;  %v3059_v30 = vld [vmem:[%s4141_s5 + $0xb0] sm:$0xff]  }
 0x25a   : > { %v2572_v35 = vpack.c.bf16 %v915_v31, %v916_v33  ;;  %v2581_v14 = vpack.c.bf16 %v909_v61, %v910_v13  ;;  %v2593_v20 = vpack.c.bf16 %v940_v53, %v933_v52  ;;  %v3060_v31 = vld [vmem:[%s4141_s5 + $0x70] sm:$0xff]   ;;  %v3062_v33 = vld [vmem:[%s4141_s5 + $0xa8] sm:$0xff]  }
 0x25b   : > { %2778 = vmatprep.subr.bf16.mxu1 %v3060_v31 }
 0x25c   : > { %2573 = vmatmul.mubr.msk.bf16.vlgmr.msra.gmra.mxu0 %vm3622_vm11, %v2572_v35  ;;  %v3063_v35 = vld [vmem:[%s4141_s5 + $0x68] sm:$0xff]  }
 0x25d   : > { %2913 = vmatpush3.bf16.msra.mxu0 %v3048_v1  ;;  %1193 = vmatprep.mubr.bf16.mxu0 %v954_v39  ;;  %v927_v1 = vrot.slane %v3611_v32, 1  ;;  %v3061_v32 = vld [vmem:[%s4141_s5 + $0x30] sm:$0xff]   ;;  %v3066_v39 = vld [vmem:[%s4141_s5 + $0x60] sm:$0xff]  }
 0x25e   : > { %2914 = vmatprep.subr.bf16.mxu0 %v3049_v36  ;;  %2779 = vmatpush3.bf16.msra.mxu1 %v3061_v32 }
 0x25f   : > { %v938_v12 = vsel %vm622_vm3, %v926_v9, %v927_v1  ;;  %v937_v21 = vsel %vm622_vm3, %v927_v1, %v928_v19  ;;  %2780 = vmatprep.subr.bf16.mxu1 %v3063_v35 }
 0x260   : > { %v2584_v17 = vpack.c.bf16 %v938_v12, %v939_v2  ;;  %v2587_v22 = vpack.c.bf16 %v936_v44, %v937_v21 }
 0x261   : > { %2915 = vmatpush3.bf16.msra.mxu0 %v3049_v36  ;;  %v3064_v36 = vld [vmem:[%s4141_s5 + $0x28] sm:$0xff]  }
 0x262   : > { %2916 = vmatprep.subr.bf16.mxu0 %v3050_v45  ;;  %2781 = vmatpush3.bf16.msra.mxu1 %v3064_v36 }
 0x263   : > { %2782 = vmatprep.subr.bf16.mxu1 %v3066_v39 }
 0x264   : > { %2576 = vmatmul.mubr.msk.bf16.gmra.mxu0 %vm3646_vm5, %v2575_v50  ;;  %v3073_v50 = vld [vmem:[%s4141_s5 + $0x10] sm:$0xff]  }
 0x265   : > { %2917 = vmatpush3.bf16.msra.mxu0 %v3050_v45  ;;  %1201 = vmatprep.mubr.bf16.mxu0 %v955_v57  ;;  %v3068_v45 = vld [vmem:[%s4141_s5 + $0x98] sm:$0xff]   ;;  %v3076_v57 = vld [vmem:[%s4141_s5 + $0x8] sm:$0xff]  }
 0x266   : > { %2918 = vmatprep.subr.bf16.mxu0 %v3051_v51  ;;  %2783 = vmatpush3.bf16.msra.mxu1 %v3067_v40 }
 0x267   : > { %2784 = vmatprep.subr.bf16.mxu1 %v3069_v47 }
 0x269   : > { %2919 = vmatpush3.bf16.msra.mxu0 %v3051_v51  ;;  %v3074_v51 = vld [vmem:[%s4141_s5 + $0x88] sm:$0xff]  }
 0x26a   : > { %2920 = vmatprep.subr.bf16.mxu0 %v3052_v60  ;;  %2785 = vmatpush3.bf16.msra.mxu1 %v3070_v41 }
 0x26b   : > { %2786 = vmatprep.subr.bf16.mxu1 %v3072_v43 }
 0x26c   : > { %2579 = vmatmul.mubr.msk.bf16.gmra.mxu0 %vm3666_vm8, %v2578_v63 }
 0x26d   : > { %2921 = vmatpush3.bf16.msra.mxu0 %v3052_v60  ;;  %1209 = vmatprep.mubr.bf16.mxu0 %v956_v7  ;;  %v3078_v60 = vld [vmem:[%s4141_s5 + $0x40] sm:$0xff]  }
 0x26e   : > { %2922 = vmatprep.subr.bf16.mxu0 %v3053_v4  ;;  %2787 = vmatpush3.bf16.msra.mxu1 %v3073_v50 }
 0x26f   : > { %2788 = vmatprep.subr.bf16.mxu1 %v3075_v55 }
 0x271   : > { %2923 = vmatpush3.bf16.msra.mxu0 %v3053_v4 }
 0x272   : > { %2924 = vmatprep.subr.bf16.mxu0 %v3054_v58  ;;  %2789 = vmatpush3.bf16.msra.mxu1 %v3076_v57 }
 0x273   : > { %2790 = vmatprep.subr.bf16.mxu1 %v3078_v60 }
 0x274   : > { %2582 = vmatmul.mubr.msk.bf16.gmra.mxu0 %vm3534_vm15, %v2581_v14 }
 0x275   : > { %2925 = vmatpush3.bf16.msra.mxu0 %v3054_v58  ;;  %2928 = vmatprep.mubr.msk.bf16.mxu0 %vm3694_vm10, %v2584_v17 }
 0x276   : > { %2926 = vmatprep.subr.bf16.mxu0 %v3055_v15  ;;  %2791 = vmatpush3.bf16.msra.mxu1 %v3079_v48 }
 0x279   : > { %2927 = vmatpush3.bf16.msra.mxu0 %v3055_v15 }
 0x27a   : > { %2936 = vmatprep.subr.bf16.mxu0 %v3056_v5 }
 0x27c   : > { %2929 = vmatmul.mubr.msk.bf16.vlgmr.msra.gmra.mxu0 %vm3715_vm13, %v2587_v22 }
 0x27d   : > { %2932 = vmatprep.mubr.msk.bf16.mxu0 %vm3724_vm1, %v2590_v26  ;;  %2937 = vmatpush3.bf16.msra.mxu0 %v3056_v5 }
 0x27e   : > { %2938 = vmatprep.subr.bf16.mxu0 %v3059_v30 }
 0x281   : > { %2939 = vmatpush3.bf16.msra.mxu0 %v3059_v30 }
 0x282   : > { %2940 = vmatprep.subr.bf16.mxu0 %v3062_v33 }
 0x284   : > { %2933 = vmatmul.mubr.msk.bf16.gmra.mxu0 %vm3538_vm6, %v2593_v20 }
 0x285   : > { %2941 = vmatpush3.bf16.msra.mxu0 %v3062_v33 }
 0x286   : > { %2942 = vmatprep.subr.bf16.mxu0 %v3065_v38 }
 0x289   : > { %2943 = vmatpush3.bf16.msra.mxu0 %v3065_v38 }
 0x28a   : > { %2944 = vmatprep.subr.bf16.mxu0 %v3068_v45 }
 0x28d   : > { %2945 = vmatpush3.bf16.msra.mxu0 %v3068_v45 }
 0x28e   : > { %2946 = vmatprep.subr.bf16.mxu0 %v3071_v42 }
 0x291   : > { %2947 = vmatpush3.bf16.msra.mxu0 %v3071_v42 }
 0x292   : > { %2948 = vmatprep.subr.bf16.mxu0 %v3074_v51 }
 0x295   : > { %2949 = vmatpush3.bf16.msra.mxu0 %v3074_v51 }
 0x296   : > { %2950 = vmatprep.subr.bf16.mxu0 %v3077_v59 }
 0x299   : > { %2951 = vmatpush3.bf16.msra.mxu0 %v3077_v59 }
 0x31c   : > { %v2740_v49 = vpop.f32.mrf.mxu0 }
 0x31e   : > { %v2741_v62 = vpop.f32.mrf.mxu0 }
 0x31f   : > { %v2742_v17 = vadd.f32 %v2741_v62, %v2740_v49 }
 0x320   : > { %v2743_v63 = vpop.f32.mrf.mxu0 }
 0x322   : > { %v2744_v4 = vpop.f32.mrf.mxu0 }
 0x323   : > { %v2745_v22 = vadd.f32 %v2744_v4, %v2743_v63 }
 0x324   : > { %v2746_v7 = vpop.f32.mrf.mxu0 }
 0x326   : > { %v2747_v1 = vpop.f32.mrf.mxu0 }
 0x327   : > { %v2748_v18 = vadd.f32 %v2747_v1, %v2746_v7 }
 0x328   : > { %v2749_v8 = vpop.f32.mrf.mxu0 }
 0x32a   : > { %v2750_v9 = vpop.f32.mrf.mxu0 }
 0x32b   : > { %v2751_v3 = vadd.f32 %v2750_v9, %v2749_v8 }
 0x32c   : > { %v2752_v58 = vpop.f32.mrf.mxu0 }
 0x32e   : > { %v2753_v61 = vpop.f32.mrf.mxu0 }
 0x32f   : > { %v2754_v30 = vadd.f32 %v2753_v61, %v2752_v58 }
 0x330   : > { %v2755_v10 = vpop.f32.mrf.mxu0 }
 0x332   : > { %v2756_v12 = vpop.f32.mrf.mxu0 }
 0x333   : > { %v2757_v47 = vadd.f32 %v2756_v12, %v2755_v10 }
 0x334   : > { %v2758_v13 = vpop.f32.mrf.mxu0 }
 0x336   : > { %v2759_v14 = vpop.f32.mrf.mxu0 }
 0x337   : > { %v2760_v5 = vadd.f32 %v2759_v14, %v2758_v13 }
 0x338   : > { %v2761_v2 = vpop.f32.mrf.mxu0 }
 0x33a   : > { %v2762_v15 = vpop.f32.mrf.mxu0 }
 0x33b   : > { %v2763_v32 = vadd.f32 %v2762_v15, %v2761_v2 }
 0x33c   : > { %v2930_v16 = vpop.f32.mrf.mxu0 }
 0x33d   : > { %v1261_v44 = vadd.f32 %v2930_v16, %v2748_v18 }
 0x33e   : > { %v1252_v19 = vpop.f32.mrf.mxu0 }
 0x33f   : > { %v1253_v46 = vadd.f32 %v2742_v17, %v1252_v19  ;;  %v1285_v52 = vmax.f32 %v1261_v44, 0.0 }
 0x340   : > { %v2931_v21 = vpop.f32.mrf.mxu0 }
 0x341   : > { %v1264_v23 = vadd.f32 %v2931_v21, %v2751_v3  ;;  %v1283_v53 = vmax.f32 %v1253_v46, 0.0  ;;  %v1317_v36 = vrot.slane %v1285_v52, 1  ;;  %v1293_v18 = vrot.slane %v1285_v52, 7 }
 0x342   : > { %v1255_v25 = vpop.f32.mrf.mxu0 }
 0x343   : > { %v1256_v26 = vadd.f32 %v2745_v22, %v1255_v25  ;;  %v3810_v0 = vmax.f32 %v1264_v23, 0.0  ;;  %v1315_v38 = vrot.slane %v1283_v53, 1  ;;  %v1291_v62 = vrot.slane %v1283_v53, 7 }
 0x344   : > { %v2934_v20 = vpop.f32.mrf.mxu0 }
 0x345   : > { %v1284_v28 = vmax.f32 %v1256_v26, 0.0  ;;  %v1277_v35 = vadd.f32 %v2934_v20, %v2760_v5  ;;  %v1318_v41 = vrot.slane %v3810_v0, 1  ;;  %v1344_v2 = vpack.c.bf16 %v3810_v0, %v1285_v52 }
 0x346   : > { %v1268_v31 = vpop.f32.mrf.mxu0  ;;  %v1294_v19 = vrot.slane %v3810_v0, 7 }
 0x347   : > { %v1316_v33 = vrot.slane %v1284_v28, 1  ;;  %v1269_v39 = vadd.f32 %v2754_v30, %v1268_v31  ;;  %v1343_v45 = vpack.c.bf16 %v1284_v28, %v1283_v53  ;;  %v1292_v43 = vrot.slane %v1284_v28, 7 }
 0x348   : > { %v2935_v40 = vpop.f32.mrf.mxu0  ;;  %v1289_v59 = vmax.f32 %v1277_v35, 0.0  ;;  %v1327_v1 = vsel %vm622_vm3, %v1317_v36, %v1318_v41  ;;  %v1303_v22 = vsel %vm557_vm2, %v1293_v18, %v1294_v19  ;;  %v3081_v35 = vld [vmem:[%s4142_s6 + $0xb0] sm:$0xff]  }
 0x349   : > { %v1280_v42 = vadd.f32 %v2935_v40, %v2763_v32  ;;  %v1287_v50 = vmax.f32 %v1269_v39, 0.0  ;;  %1575 = vmatprep.mubr.bf16.mxu1 %v1343_v45  ;;  %v1328_v55 = vsel %vm622_vm3, %v1316_v33, %v1317_v36  ;;  %v1329_v57 = vsel %vm622_vm3, %v1315_v38, %v1316_v33  ;;  %v3080_v33 = vld [vmem:[%s4142_s6 + $0xb8] sm:$0xff]   ;;  %v3082_v36 = vld [vmem:[%s4142_s6 + $0xa8] sm:$0xff]   ;;  %v3085_v39 = vld [vmem:[%s4142_s6 + $0xa0] sm:$0xff]  }
 0x34a   : > { %v1271_v51 = vpop.f32.mrf.mxu0  ;;  %v2632_v49 = vpack.c.bf16 %v1328_v55, %v1329_v57  ;;  %v1305_v8 = vsel %vm557_vm2, %v1291_v62, %v1292_v43  ;;  %v1321_v58 = vrot.slane %v1289_v59, 1  ;;  %v1304_v46 = vsel %vm557_vm2, %v1292_v43, %v1293_v18  ;;  %2960 = vmatprep.subr.bf16.mxu0 %v3080_v33  ;;  %v3084_v40 = vld [vmem:[%s4142_s6 + $0x38] sm:$0xff]   ;;  %v3086_v45 = vld [vmem:[%s4142_s6 + $0x70] sm:$0xff]   ;;  %v3094_v55 = vld [vmem:[%s4142_s6 + $0x88] sm:$0xff]  }
 0x34b   : > { %v1290_v60 = vmax.f32 %v1280_v42, 0.0  ;;  %v1272_v48 = vadd.f32 %v2757_v47, %v1271_v51  ;;  %v1319_v63 = vrot.slane %v1287_v50, 1  ;;  %v2623_v23 = vpack.c.bf16 %v1303_v22, %v1304_v46  ;;  %v3088_v47 = vld [vmem:[%s4142_s6 + $0x98] sm:$0xff]   ;;  %v3089_v42 = vld [vmem:[%s4142_s6 + $0x68] sm:$0xff]   ;;  %v3091_v43 = vld [vmem:[%s4142_s6 + $0x90] sm:$0xff]  }
 0x34c   : > { %2952 = vmatprep.mubr.msk.bf16.mxu0 %vm3694_vm10, %v2632_v49  ;;  %v1295_v52 = vrot.slane %v1287_v50, 7  ;;  %v1297_v28 = vrot.slane %v1289_v59, 7  ;;  %v3092_v51 = vld [vmem:[%s4142_s6 + $0x60] sm:$0xff]   ;;  %v3098_v49 = vld [vmem:[%s4142_s6 + $0x50] sm:$0xff]  }
 0x34d   : > { %v1298_v4 = vrot.slane %v1290_v60, 7  ;;  %v1288_v7 = vmax.f32 %v1272_v48, 0.0  ;;  %v1326_v9 = vsel %vm622_vm3, %v1318_v41, %v1319_v63  ;;  %v1322_v13 = vrot.slane %v1290_v60, 1  ;;  %v3087_v41 = vld [vmem:[%s4142_s6 + $0x30] sm:$0xff]   ;;  %v3093_v57 = vld [vmem:[%s4142_s6 + $0x20] sm:$0xff]   ;;  %v3096_v48 = vld [vmem:[%s4142_s6 + $0x18] sm:$0xff]  }
 0x34e   : > { %v2635_v61 = vpack.c.bf16 %v1326_v9, %v1327_v1  ;;  %v1302_v20 = vsel %vm557_vm2, %v1294_v19, %v1295_v52  ;;  %v1346_v0 = vpack.c.bf16 %v1290_v60, %v1289_v59  ;;  %v3095_v59 = vld [vmem:[%s4142_s6 + $0x58] sm:$0xff]   ;;  %v3097_v60 = vld [vmem:[%s4142_s6 + $0x80] sm:$0xff]  }
 0x34f   : > { %v1306_v10 = vsel %vm557_vm2, %v1298_v4, %v1291_v62  ;;  %v1320_v12 = vrot.slane %v1288_v7, 1  ;;  %v1323_v3 = vsel %vm622_vm3, %v1321_v58, %v1322_v13  ;;  %v1330_v44 = vsel %vm622_vm3, %v1322_v13, %v1315_v38  ;;  %v3083_v38 = vld [vmem:[%s4142_s6 + $0x78] sm:$0xff]   ;;  %v3099_v62 = vld [vmem:[%s4142_s6 + $0x10] sm:$0xff]   ;;  %v3103_v1 = vld [vmem:[%s4142_s6] sm:$0xff]  }
 0x350   : > { %v2620_v14 = vpack.c.bf16 %v1305_v8, %v1306_v10  ;;  %2953 = vmatmul.mubr.msk.bf16.vlgmr.msra.gmra.mxu0 %vm3715_vm13, %v2635_v61  ;;  %v2641_v21 = vpack.c.bf16 %v1330_v44, %v1323_v3  ;;  %v1296_v25 = vrot.slane %v1288_v7, 7  ;;  %v1345_v26 = vpack.c.bf16 %v1288_v7, %v1287_v50  ;;  %2828 = vmatprep.subr.bf16.mxu1 %v3083_v38  ;;  %v3090_v50 = vld [vmem:[%s4142_s6 + $0x28] sm:$0xff]   ;;  %v3102_v7 = vld [vmem:[%s4142_s6 + $0x40] sm:$0xff]  }
 0x351   : > { %v1324_v15 = vsel %vm622_vm3, %v1320_v12, %v1321_v58  ;;  %v1325_v16 = vsel %vm622_vm3, %v1319_v63, %v1320_v12  ;;  %v1299_v31 = vsel %vm557_vm2, %v1297_v28, %v1298_v4  ;;  %2961 = vmatpush3.bf16.msra.mxu0 %v3080_v33  ;;  %v3100_v63 = vld [vmem:[%s4142_s6 + $0x48] sm:$0xff]  }
 0x352   : > { %2621 = vmatmul.mubr.msk.bf16.vlgmr.msra.gmra.mxu1 %vm3622_vm11, %v2620_v14  ;;  %v2638_v17 = vpack.c.bf16 %v1324_v15, %v1325_v16  ;;  %v1301_v53 = vsel %vm557_vm2, %v1295_v52, %v1296_v25  ;;  %v1300_v30 = vsel %vm557_vm2, %v1296_v25, %v1297_v28  ;;  %2962 = vmatprep.subr.bf16.mxu0 %v3081_v35  ;;  %v3101_v4 = vld [vmem:[%s4142_s6 + $0x8] sm:$0xff]  }
 0x353   : > { %1583 = vmatprep.mubr.bf16.mxu1 %v1344_v2  ;;  %v2626_v5 = vpack.c.bf16 %v1301_v53, %v1302_v20  ;;  %v2629_v32 = vpack.c.bf16 %v1299_v31, %v1300_v30  ;;  %2829 = vmatpush3.bf16.msra.mxu1 %v3084_v40 }
 0x354   : > { %2956 = vmatprep.mubr.msk.bf16.mxu0 %vm3724_vm1, %v2638_v17  ;;  %2830 = vmatprep.subr.bf16.mxu1 %v3086_v45 }
 0x355   : > { %2963 = vmatpush3.bf16.msra.mxu0 %v3081_v35 }
 0x356   : > { %2964 = vmatprep.subr.bf16.mxu0 %v3082_v36 }
 0x357   : > { %2831 = vmatpush3.bf16.msra.mxu1 %v3087_v41 }
 0x358   : > { %2957 = vmatmul.mubr.msk.bf16.gmra.mxu0 %vm3538_vm6, %v2641_v21  ;;  %2832 = vmatprep.subr.bf16.mxu1 %v3089_v42 }
 0x359   : > { %2965 = vmatpush3.bf16.msra.mxu0 %v3082_v36 }
 0x35a   : > { %2624 = vmatmul.mubr.msk.bf16.gmra.mxu1 %vm3646_vm5, %v2623_v23  ;;  %2966 = vmatprep.subr.bf16.mxu0 %v3085_v39 }
 0x35b   : > { %1591 = vmatprep.mubr.bf16.mxu1 %v1345_v26  ;;  %2833 = vmatpush3.bf16.msra.mxu1 %v3090_v50 }
 0x35c   : > { %2834 = vmatprep.subr.bf16.mxu1 %v3092_v51 }
 0x35d   : > { %2967 = vmatpush3.bf16.msra.mxu0 %v3085_v39 }
 0x35e   : > { %2968 = vmatprep.subr.bf16.mxu0 %v3088_v47 }
 0x35f   : > { %2835 = vmatpush3.bf16.msra.mxu1 %v3093_v57 }
 0x360   : > { %2836 = vmatprep.subr.bf16.mxu1 %v3095_v59 }
 0x361   : > { %2969 = vmatpush3.bf16.msra.mxu0 %v3088_v47 }
 0x362   : > { %2627 = vmatmul.mubr.msk.bf16.gmra.mxu1 %vm3666_vm8, %v2626_v5  ;;  %2970 = vmatprep.subr.bf16.mxu0 %v3091_v43 }
 0x363   : > { %1599 = vmatprep.mubr.bf16.mxu1 %v1346_v0  ;;  %2837 = vmatpush3.bf16.msra.mxu1 %v3096_v48 }
 0x364   : > { %2838 = vmatprep.subr.bf16.mxu1 %v3098_v49 }
 0x365   : > { %2971 = vmatpush3.bf16.msra.mxu0 %v3091_v43 }
 0x366   : > { %2972 = vmatprep.subr.bf16.mxu0 %v3094_v55 }
 0x367   : > { %2839 = vmatpush3.bf16.msra.mxu1 %v3099_v62 }
 0x368   : > { %2840 = vmatprep.subr.bf16.mxu1 %v3100_v63 }
 0x369   : > { %2973 = vmatpush3.bf16.msra.mxu0 %v3094_v55 }
 0x36a   : > { %2630 = vmatmul.mubr.msk.bf16.gmra.mxu1 %vm3534_vm15, %v2629_v32  ;;  %2974 = vmatprep.subr.bf16.mxu0 %v3097_v60 }
 0x36b   : > { %2841 = vmatpush3.bf16.msra.mxu1 %v3101_v4 }
 0x36c   : > { %2842 = vmatprep.subr.bf16.mxu1 %v3102_v7 }
 0x36d   : > { %2975 = vmatpush3.bf16.msra.mxu0 %v3097_v60 }
 0x36f   : > { %2843 = vmatpush3.bf16.msra.mxu1 %v3103_v1 }
 0x410   : > { %v2954_v8 = vpop.f32.mrf.mxu0 }
 0x412   : > { %v2792_v9 = vpop.f32.mrf.mxu1  ;;  %v1642_v58 = vpop.f32.mrf.mxu0 }
 0x414   : > { %v2793_v61 = vpop.f32.mrf.mxu1  ;;  %v2955_v12 = vpop.f32.mrf.mxu0 }
 0x415   : > { %v2794_v10 = vadd.f32 %v2793_v61, %v2792_v9 }
 0x416   : > { %v2795_v13 = vpop.f32.mrf.mxu1  ;;  %v1645_v16 = vpop.f32.mrf.mxu0 }
 0x417   : > { %v1643_v2 = vadd.f32 %v2794_v10, %v1642_v58 }
 0x418   : > { %v2796_v14 = vpop.f32.mrf.mxu1  ;;  %v2958_v21 = vpop.f32.mrf.mxu0 }
 0x419   : > { %v2797_v15 = vadd.f32 %v2796_v14, %v2795_v13  ;;  %v3935_v3 = vmax.f32 %v1643_v2, 0.0 }
 0x41a   : > { %v2798_v17 = vpop.f32.mrf.mxu1  ;;  %v1658_v5 = vpop.f32.mrf.mxu0 }
 0x41b   : > { %v1646_v18 = vadd.f32 %v2797_v15, %v1645_v16  ;;  %v1705_v28 = vrot.slane %v3935_v3, 1  ;;  %v1681_v16 = vrot.slane %v3935_v3, 7 }
 0x41c   : > { %v2799_v19 = vpop.f32.mrf.mxu1  ;;  %v2959_v39 = vpop.f32.mrf.mxu0 }
 0x41d   : > { %v3937_v44 = vmax.f32 %v1646_v18, 0.0  ;;  %v2800_v46 = vadd.f32 %v2799_v19, %v2798_v17 }
 0x41e   : > { %v2801_v22 = vpop.f32.mrf.mxu1  ;;  %v1661_v51 = vpop.f32.mrf.mxu0 }
 0x41f   : > { %v1651_v23 = vadd.f32 %v2954_v8, %v2800_v46  ;;  %v1733_v25 = vpack.c.bf16 %v3937_v44, %v3935_v3  ;;  %v1706_v52 = vrot.slane %v3937_v44, 1 }
 0x420   : > { %v2802_v26 = vpop.f32.mrf.mxu1 }
 0x421   : > { %v3942_v53 = vmax.f32 %v1651_v23, 0.0  ;;  %v2803_v20 = vadd.f32 %v2802_v26, %v2801_v22  ;;  %1965 = vmatprep.mubr.bf16.mxu1 %v1733_v25  ;;  %v1719_v38 = vsel %vm622_vm3, %v1705_v28, %v1706_v52 }
 0x422   : > { %v2804_v0 = vpop.f32.mrf.mxu1 }
 0x423   : > { %v1707_v30 = vrot.slane %v3942_v53, 1  ;;  %v1654_v31 = vadd.f32 %v2955_v12, %v2803_v20  ;;  %v1682_v12 = vrot.slane %v3937_v44, 7  ;;  %v1683_v23 = vrot.slane %v3942_v53, 7 }
 0x424   : > { %v2805_v32 = vpop.f32.mrf.mxu1 }
 0x425   : > { %v3946_v33 = vmax.f32 %v1654_v31, 0.0  ;;  %v2806_v35 = vadd.f32 %v2805_v32, %v2804_v0  ;;  %v1718_v36 = vsel %vm622_vm3, %v1706_v52, %v1707_v30  ;;  %v1695_v18 = vsel %vm557_vm2, %v1681_v16, %v1682_v12 }
 0x426   : > { %v2807_v40 = vpop.f32.mrf.mxu1  ;;  %v2680_v45 = vpack.c.bf16 %v1718_v36, %v1719_v38  ;;  %v1694_v26 = vsel %vm557_vm2, %v1682_v12, %v1683_v23 }
 0x427   : > { %v1659_v47 = vadd.f32 %v2806_v35, %v1658_v5  ;;  %v1708_v42 = vrot.slane %v3946_v33, 1  ;;  %v1684_v3 = vrot.slane %v3946_v33, 7  ;;  %v1734_v27 = vpack.c.bf16 %v3946_v33, %v3942_v53 }
 0x428   : > { %v2808_v41 = vpop.f32.mrf.mxu1  ;;  %2976 = vmatprep.mubr.msk.bf16.mxu0 %vm3694_vm10, %v2680_v45 }
 0x429   : > { %v1677_v43 = vmax.f32 %v1659_v47, 0.0  ;;  %v2809_v50 = vadd.f32 %v2808_v41, %v2807_v40  ;;  %v1717_v48 = vsel %vm622_vm3, %v1707_v30, %v1708_v42  ;;  %v1693_v25 = vsel %vm557_vm2, %v1683_v23, %v1684_v3 }
 0x42a   : > { %v2810_v55 = vpop.f32.mrf.mxu1  ;;  %v2671_v52 = vpack.c.bf16 %v1693_v25, %v1694_v26 }
 0x42b   : > { %v1709_v57 = vrot.slane %v1677_v43, 1  ;;  %v1662_v59 = vadd.f32 %v2809_v50, %v1661_v51  ;;  %v1685_v37 = vrot.slane %v1677_v43, 7 }
 0x42c   : > { %v2811_v60 = vpop.f32.mrf.mxu1 }
 0x42d   : > { %v1716_v49 = vsel %vm622_vm3, %v1708_v42, %v1709_v57  ;;  %v1678_v62 = vmax.f32 %v1662_v59, 0.0  ;;  %v2812_v63 = vadd.f32 %v2811_v60, %v2810_v55  ;;  %v1692_v53 = vsel %vm557_vm2, %v1684_v3, %v1685_v37 }
 0x42e   : > { %v2683_v4 = vpack.c.bf16 %v1716_v49, %v1717_v48  ;;  %v2813_v11 = vpop.f32.mrf.mxu1 }
 0x42f   : > { %v1667_v7 = vadd.f32 %v2958_v21, %v2812_v63  ;;  %v1710_v8 = vrot.slane %v1678_v62, 1  ;;  %v1686_v20 = vrot.slane %v1678_v62, 7  ;;  %v1735_v5 = vpack.c.bf16 %v1678_v62, %v1677_v43 }
 0x430   : > { %v2814_v1 = vpop.f32.mrf.mxu1  ;;  %2977 = vmatmul.mubr.msk.bf16.vlgmr.msra.gmra.mxu0 %vm3715_vm13, %v2683_v4 }
 0x431   : > { %v1679_v9 = vmax.f32 %v1667_v7, 0.0  ;;  %v2815_v58 = vadd.f32 %v2814_v1, %v2813_v11  ;;  %v1715_v2 = vsel %vm622_vm3, %v1709_v57, %v1710_v8  ;;  %v1691_v34 = vsel %vm557_vm2, %v1685_v37, %v1686_v20 }
 0x432   : > { %v2674_v0 = vpack.c.bf16 %v1691_v34, %v1692_v53 }
 0x433   : > { %v1711_v61 = vrot.slane %v1679_v9, 1  ;;  %v1670_v10 = vadd.f32 %v2959_v39, %v2815_v58  ;;  %v1687_v30 = vrot.slane %v1679_v9, 7 }
 0x435   : > { %v1680_v13 = vmax.f32 %v1670_v10, 0.0  ;;  %v1714_v14 = vsel %vm622_vm3, %v1710_v8, %v1711_v61  ;;  %v1690_v54 = vsel %vm557_vm2, %v1686_v20, %v1687_v30 }
 0x436   : > { %v2686_v15 = vpack.c.bf16 %v1714_v14, %v1715_v2 }
 0x437   : > { %v1688_v17 = vrot.slane %v1680_v13, 7  ;;  %v1712_v24 = vrot.slane %v1680_v13, 1 }
 0x438   : > { %2980 = vmatprep.mubr.msk.bf16.mxu0 %vm3724_vm1, %v2686_v15 }
 0x439   : > { %v1696_v19 = vsel %vm557_vm2, %v1688_v17, %v1681_v16  ;;  %v1713_v44 = vsel %vm622_vm3, %v1711_v61, %v1712_v24  ;;  %v1720_v46 = vsel %vm622_vm3, %v1712_v24, %v1705_v28  ;;  %v1736_v28 = vpack.c.bf16 %v1680_v13, %v1679_v9 }
 0x43a   : > { %v2668_v21 = vpack.c.bf16 %v1695_v18, %v1696_v19  ;;  %v2689_v22 = vpack.c.bf16 %v1720_v46, %v1713_v44  ;;  %v1689_v31 = vsel %vm557_vm2, %v1687_v30, %v1688_v17 }
 0x43b   : > { %v2677_v32 = vpack.c.bf16 %v1689_v31, %v1690_v54 }
 0x43c   : > { %2669 = vmatmul.mubr.msk.bf16.vlgmr.msra.gmra.mxu1 %vm3622_vm11, %v2668_v21  ;;  %2981 = vmatmul.mubr.msk.bf16.gmra.mxu0 %vm3538_vm6, %v2689_v22 }
 0x43d   : > { %1973 = vmatprep.mubr.bf16.mxu1 %v1734_v27 }
 0x444   : > { %2672 = vmatmul.mubr.msk.bf16.gmra.mxu1 %vm3646_vm5, %v2671_v52 }
 0x445   : > { %1981 = vmatprep.mubr.bf16.mxu1 %v1735_v5 }
 0x44c   : > { %2675 = vmatmul.mubr.msk.bf16.gmra.mxu1 %vm3666_vm8, %v2674_v0 }
 0x44d   : > { %1989 = vmatprep.mubr.bf16.mxu1 %v1736_v28 }
 0x454   : > { %2678 = vmatmul.mubr.msk.bf16.gmra.mxu1 %vm3534_vm15, %v2677_v32 }
 0x4f0   : > { %v2978_v33 = vpop.f32.mrf.mxu0 }
 0x4f2   : > { %v2032_v35 = vpop.f32.mrf.mxu0 }
 0x4f4   : > { %v2979_v40 = vpop.f32.mrf.mxu0 }
 0x4f6   : > { %v2035_v43 = vpop.f32.mrf.mxu0 }
 0x4fc   : > { %v2844_v36 = vpop.f32.mrf.mxu1  ;;  %v2982_v59 = vpop.f32.mrf.mxu0 }
 0x4fe   : > { %v2845_v38 = vpop.f32.mrf.mxu1  ;;  %v2048_v11 = vpop.f32.mrf.mxu0 }
 0x4ff   : > { %v2846_v39 = vadd.f32 %v2845_v38, %v2844_v36 }
 0x500   : > { %v2847_v6 = vpop.f32.mrf.mxu1  ;;  %v2983_v10 = vpop.f32.mrf.mxu0 }
 0x501   : > { %v4003_v45 = vadd.f32 %v2846_v39, %v2032_v35 }
 0x502   : > { %v2848_v47 = vpop.f32.mrf.mxu1  ;;  %v2051_v17 = vpop.f32.mrf.mxu0 }
 0x503   : > { %v2849_v41 = vadd.f32 %v2848_v47, %v2847_v6  ;;  %v2063_v42 = vmax.f32 %v4003_v45, 0.0 }
 0x504   : > { %v2850_v56 = vpop.f32.mrf.mxu1 }
 0x505   : > { %v4006_v50 = vadd.f32 %v2849_v41, %v2035_v43  ;;  %v2071_v29 = vsel %vm703_vm7, %v2063_v42, 0.0 }
 0x506   : > { %v2851_v51 = vpop.f32.mrf.mxu1  ;;  %2072 = vadd.xlane.f32.xlu0 %v2071_v29 }
 0x507   : > { %v2852_v55 = vadd.f32 %v2851_v51, %v2850_v56  ;;  %v2064_v57 = vmax.f32 %v4006_v50, 0.0 }
 0x508   : > { %v2853_v60 = vpop.f32.mrf.mxu1 }
 0x509   : > { %v2041_v48 = vadd.f32 %v2978_v33, %v2852_v55  ;;  %v2074_v49 = vsel %vm703_vm7, %v2064_v57, 0.0 }
 0x50a   : > { %v2854_v62 = vpop.f32.mrf.mxu1  ;;  %2075 = vadd.xlane.f32.xlu1 %v2074_v49 }
 0x50b   : > { %v2855_v63 = vadd.f32 %v2854_v62, %v2853_v60  ;;  %v2065_v4 = vmax.f32 %v2041_v48, 0.0 }
 0x50c   : > { %v2856_v7 = vpop.f32.mrf.mxu1 }
 0x50d   : > { %v2044_v1 = vadd.f32 %v2979_v40, %v2855_v63  ;;  %v2077_v8 = vsel %vm703_vm7, %v2065_v4, 0.0 }
 0x50e   : > { %v2857_v9 = vpop.f32.mrf.mxu1  ;;  %2078 = vadd.xlane.f32.xlu0 %v2077_v8 }
 0x50f   : > { %v2858_v58 = vadd.f32 %v2857_v9, %v2856_v7  ;;  %v2066_v61 = vmax.f32 %v2044_v1, 0.0 }
 0x510   : > { %v2859_v12 = vpop.f32.mrf.mxu1 }
 0x511   : > { %v2049_v13 = vadd.f32 %v2858_v58, %v2048_v11  ;;  %v2080_v14 = vsel %vm703_vm7, %v2066_v61, 0.0 }
 0x512   : > { %v2860_v2 = vpop.f32.mrf.mxu1  ;;  %2081 = vadd.xlane.f32.xlu0 %v2080_v14  ;;  %v3107_v14 = vld [vmem:[%s4145_s9 + $0x30] sm:$0xff]  }
 0x513   : > { %v2861_v15 = vadd.f32 %v2860_v2, %v2859_v12  ;;  %v2067_v16 = vmax.f32 %v2049_v13, 0.0  ;;  %v3105_v12 = vld [vmem:[%s4145_s9 + $0x38] sm:$0xff]   ;;  %v3106_v13 = vld [vmem:[%s4145_s9 + $0x70] sm:$0xff]   ;;  %v3108_v2 = vld [vmem:[%s4145_s9 + $0x68] sm:$0xff]  }
 0x514   : > { %v2862_v24 = vpop.f32.mrf.mxu1 }
 0x515   : > { %v2052_v18 = vadd.f32 %v2861_v15, %v2051_v17  ;;  %v2085_v19 = vsel %vm703_vm7, %v2067_v16, 0.0  ;;  %v3109_v15 = vld [vmem:[%s4145_s9 + $0x28] sm:$0xff]   ;;  %v3111_v17 = vld [vmem:[%s4145_s9 + $0x20] sm:$0xff]  }
 0x516   : > { %v2863_v44 = vpop.f32.mrf.mxu1  ;;  %2086 = vadd.xlane.f32.xlu1 %v2085_v19  ;;  %v3114_v19 = vld [vmem:[%s4145_s9 + $0x50] sm:$0xff]  }
 0x517   : > { %v2864_v46 = vadd.f32 %v2863_v44, %v2862_v24  ;;  %v2068_v21 = vmax.f32 %v2052_v18, 0.0  ;;  %v3112_v24 = vld [vmem:[%s4145_s9 + $0x58] sm:$0xff]   ;;  %v3115_v44 = vld [vmem:[%s4145_s9 + $0x10] sm:$0xff]  }
 0x518   : > { %v2865_v22 = vpop.f32.mrf.mxu1  ;;  %v3113_v18 = vld [vmem:[%s4145_s9 + $0x18] sm:$0xff]  }
 0x519   : > { %v2057_v3 = vadd.f32 %v2982_v59, %v2864_v46  ;;  %v2088_v27 = vsel %vm703_vm7, %v2068_v21, 0.0  ;;  %v3116_v46 = vld [vmem:[%s4145_s9 + $0x48] sm:$0xff]  }
 0x51a   : > { %v2866_v23 = vpop.f32.mrf.mxu1  ;;  %2089 = vadd.xlane.f32.xlu0 %v2088_v27 }
 0x51b   : > { %v2867_v25 = vadd.f32 %v2866_v23, %v2865_v22  ;;  %v2069_v26 = vmax.f32 %v2057_v3, 0.0  ;;  %v3118_v22 = vld [vmem:[%s4145_s9 + $0x40] sm:$0xff]  }
 0x51c   : > { %v3119_v3 = vld [vmem:[%s4145_s9] sm:$0xff]  }
 0x51d   : > { %v2060_v52 = vadd.f32 %v2983_v10, %v2867_v25  ;;  %v2093_v20 = vsel %vm703_vm7, %v2069_v26, 0.0  ;;  %v3104_v10 = vld [vmem:[%s4145_s9 + $0x78] sm:$0xff]  }
 0x51e   : > { %2094 = vadd.xlane.f32.xlu1 %v2093_v20  ;;  %2880 = vmatprep.subr.bf16.mxu1 %v3104_v10 }
 0x51f   : > { %v2070_v5 = vmax.f32 %v2060_v52, 0.0  ;;  %2881 = vmatpush3.bf16.msra.mxu1 %v3105_v12 }
 0x520   : > { %2882 = vmatprep.subr.bf16.mxu1 %v3106_v13 }
 0x521   : > { %v2096_v37 = vsel %vm703_vm7, %v2070_v5, 0.0 }
 0x522   : > { %2097 = vadd.xlane.f32.xlu0 %v2096_v37 }
 0x523   : > { %2883 = vmatpush3.bf16.msra.mxu1 %v3107_v14 }
 0x524   : > { %2884 = vmatprep.subr.bf16.mxu1 %v3108_v2 }
 0x527   : > { %2885 = vmatpush3.bf16.msra.mxu1 %v3109_v15 }
 0x58f   : > { %v2073_v34 = vpop.xlane.xlu0 %2072 }
 0x593   : > { %v2076_v0 = vpop.xlane.xlu1 %2075 }
 0x597   : > { %v2079_v53 = vpop.xlane.xlu0 %2078 }
 0x598   : > { %v2083_v31 = vadd.f32 %v2079_v53, %v2073_v34 }
 0x59b   : > { %v2082_v28 = vpop.xlane.xlu0 %2081 }
 0x59c   : > { %v2084_v35 = vadd.f32 %v2082_v28, %v2076_v0 }
 0x59f   : > { %v2087_v30 = vpop.xlane.xlu1 %2086 }
 0x5a0   : > { %v2091_v54 = vadd.f32 %v2087_v30, %v2083_v31 }
 0x5a3   : > { %v2090_v32 = vpop.xlane.xlu0 %2089 }
 0x5a4   : > { %v2092_v38 = vadd.f32 %v2090_v32, %v2084_v35 }
 0x5a7   : > { %v2095_v33 = vpop.xlane.xlu1 %2094 }
 0x5a8   : > { %v2099_v36 = vadd.f32 %v2095_v33, %v2091_v54 }
 0x5aa   : > { %v2101_v39 = vmul.f32 0.00390625, %v2099_v36 }
 0x5ab   : > { %v2098_v40 = vpop.xlane.xlu0 %2097 }
 0x5ac   : > { %v2100_v6 = vadd.f32 %v2098_v40, %v2092_v38  ;;  %v4023_v47 = vsub.f32 %v2063_v42, %v2101_v39  ;;  %v4025_v41 = vsub.f32 %v2065_v4, %v2101_v39  ;;  %v4029_v29 = vsub.f32 %v2067_v16, %v2101_v39  ;;  %v3110_v16 = vld [vmem:[%s4145_s9 + $0x60] sm:$0xff]  }
 0x5ad   : > { %v4044_v48 = vsub.f32 %v2069_v26, %v2101_v39  ;;  %2886 = vmatprep.subr.bf16.mxu1 %v3110_v16  ;;  %v2697_v40 = vld [vmem:[#allocation2 + $0x3] ss:$0 sm:$0xff] }
 0x5ae   : > { %v2102_v43 = vmul.f32 0.00390625, %v2100_v6  ;;  %v2111_v56 = vmul.f32 %v4023_v47, %v4023_v47  ;;  %v2119_v55 = vmul.f32 %v4025_v41, %v4025_v41  ;;  %v2129_v60 = vmul.f32 %v4029_v29, %v4029_v29  ;;  %2887 = vmatpush3.bf16.msra.mxu1 %v3111_v17  ;;  %v2693_v6 = vld [vmem:[#allocation2 + $0x1] ss:$0 sm:$0xff] }
 0x5af   : > { %v2139_v63 = vmul.f32 %v4044_v48, %v4044_v48  ;;  %2888 = vmatprep.subr.bf16.mxu1 %v3112_v24 }
 0x5b0   : > { %v2113_v51 = vsel %vm703_vm7, %v2111_v56, 0.0  ;;  %v4036_v59 = vsub.f32 %v2064_v57, %v2102_v43  ;;  %v4038_v45 = vsub.f32 %v2066_v61, %v2102_v43  ;;  %v2121_v49 = vsel %vm703_vm7, %v2119_v55, 0.0  ;;  %v2695_v55 = vld [vmem:[#allocation2 + $0x2] ss:$0 sm:$0xff] }
 0x5b1   : > { %2114 = vadd.xlane.f32.xlu1 %v2113_v51  ;;  %v4050_v57 = vsub.f32 %v2068_v21, %v2102_v43  ;;  %v2131_v4 = vsel %vm703_vm7, %v2129_v60, 0.0  ;;  %v4058_v1 = vsub.f32 %v2070_v5, %v2102_v43  ;;  %v2141_v8 = vsel %vm703_vm7, %v2139_v63, 0.0  ;;  %v3117_v21 = vld [vmem:[%s4145_s9 + $0x8] sm:$0xff]   ;;  %v2691_v51 = vld [vmem:[#allocation2] ss:$0 sm:$0xff] }
 0x5b2   : > { %v2112_v42 = vmul.f32 %v4036_v59, %v4036_v59  ;;  %v2120_v50 = vmul.f32 %v4038_v45, %v4038_v45  ;;  %2889 = vmatpush3.bf16.msra.mxu1 %v3113_v18  ;;  %v2698_v63 = vld [vmem:[#allocation4 + $0x3] ss:$0 sm:$0xff] }
 0x5b3   : > { %v2130_v7 = vmul.f32 %v4050_v57, %v4050_v57  ;;  %v2140_v58 = vmul.f32 %v4058_v1, %v4058_v1  ;;  %2890 = vmatprep.subr.bf16.mxu1 %v3114_v19 }
 0x5b4   : > { %v2116_v62 = vsel %vm703_vm7, %v2112_v42, 0.0  ;;  %v2124_v11 = vsel %vm703_vm7, %v2120_v50, 0.0 }
 0x5b5   : > { %2122 = vadd.xlane.f32.xlu1 %v2121_v49  ;;  %2117 = vadd.xlane.f32.xlu0 %v2116_v62  ;;  %v2134_v9 = vsel %vm703_vm7, %v2130_v7, 0.0  ;;  %v2144_v61 = vsel %vm703_vm7, %v2140_v58, 0.0 }
 0x5b6   : > { %2891 = vmatpush3.bf16.msra.mxu1 %v3115_v44 }
 0x5b7   : > { %2892 = vmatprep.subr.bf16.mxu1 %v3116_v46 }
 0x5b9   : > { %2132 = vadd.xlane.f32.xlu1 %v2131_v4  ;;  %2125 = vadd.xlane.f32.xlu0 %v2124_v11  ;;  %v2694_v4 = vld [vmem:[#allocation4 + $0x1] ss:$0 sm:$0xff] }
 0x5ba   : > { %2893 = vmatpush3.bf16.msra.mxu1 %v3117_v21  ;;  %v2699_v21 = vld [vmem:[%s4146_s10] ss:$0 sm:$0xff] }
 0x5bb   : > { %2894 = vmatprep.subr.bf16.mxu1 %v3118_v22 }
 0x5bd   : > { %2142 = vadd.xlane.f32.xlu1 %v2141_v8  ;;  %2135 = vadd.xlane.f32.xlu0 %v2134_v9  ;;  %v2696_v9 = vld [vmem:[#allocation4 + $0x2] ss:$0 sm:$0xff] }
 0x5be   : > { %2895 = vmatpush3.bf16.msra.mxu1 %v3119_v3 }
 0x5c1   : > { %2145 = vadd.xlane.f32.xlu0 %v2144_v61 }
 0x63a   : > { %v2115_v27 = vpop.xlane.xlu1 %2114 }
 0x63e   : > { %v2123_v23 = vpop.xlane.xlu1 %2122  ;;  %v2118_v25 = vpop.xlane.xlu0 %2117 }
 0x63f   : > { %v2127_v20 = vadd.f32 %v2123_v23, %v2115_v27 }
 0x642   : > { %v2133_v26 = vpop.xlane.xlu1 %2132  ;;  %v2126_v52 = vpop.xlane.xlu0 %2125 }
 0x643   : > { %v2137_v5 = vadd.f32 %v2133_v26, %v2127_v20  ;;  %v2128_v53 = vadd.f32 %v2126_v52, %v2118_v25 }
 0x646   : > { %v2143_v37 = vpop.xlane.xlu1 %2142  ;;  %v2136_v34 = vpop.xlane.xlu0 %2135 }
 0x647   : > { %v2147_v0 = vadd.f32 %v2143_v37, %v2137_v5  ;;  %v2138_v30 = vadd.f32 %v2136_v34, %v2128_v53 }
 0x649   : > { %v2149_v28 = vmul.f32 0.00390625, %v2147_v0 }
 0x64a   : > { %v2146_v31 = vpop.xlane.xlu0 %2145 }
 0x64b   : > { %v2151_v54 = vadd.f32 1e-05, %v2149_v28  ;;  %v2148_v32 = vadd.f32 %v2146_v31, %v2138_v30 }
 0x64d   : > { %3120 = vrsqrt.f32 %v2151_v54  ;;  %v2150_v33 = vmul.f32 0.00390625, %v2148_v32 }
 0x64f   : > { %v2152_v35 = vadd.f32 1e-05, %v2150_v33 }
 0x651   : > { %3122 = vrsqrt.f32 %v2152_v35 }
 0x65a   : > { %v3121_v36 = vpop.eup %3120 }
 0x65b   : > { %v2222_v38 = vmul.f32 %v3121_v36, %v4044_v48  ;;  %v2176_v39 = vmul.f32 %v3121_v36, %v4025_v41  ;;  %v2155_v43 = vmul.f32 %v3121_v36, %v4023_v47  ;;  %v2199_v56 = vmul.f32 %v3121_v36, %v4029_v29  ;;  %v2692_v29 = vld [vmem:[#allocation4] ss:$0 sm:$0xff] }
 0x65d   : > { %v2232_v49 = vmul.f32 %v2697_v40, %v2222_v38  ;;  %v2186_v50 = vmul.f32 %v2693_v6, %v2176_v39  ;;  %v2164_v48 = vmul.f32 %v2691_v51, %v2155_v43  ;;  %v2209_v7 = vmul.f32 %v2695_v55, %v2199_v56 }
 0x65e   : > { %v3123_v42 = vpop.eup %3122 }
 0x65f   : > { %v2223_v60 = vmul.f32 %v3123_v42, %v4058_v1  ;;  %v2177_v62 = vmul.f32 %v3123_v42, %v4038_v45  ;;  %v2156_v41 = vmul.f32 %v3123_v42, %v4036_v59  ;;  %v2200_v11 = vmul.f32 %v3123_v42, %v4050_v57 }
 0x660   : > { %v2242_v10 = vadd.f32 %v2698_v63, %v2232_v49  ;;  %v2196_v12 = vadd.f32 %v2694_v4, %v2186_v50  ;;  %v2173_v45 = vadd.f32 %v2692_v29, %v2164_v48  ;;  %v2219_v2 = vadd.f32 %v2696_v9, %v2209_v7 }
 0x661   : > { %v2233_v47 = vmul.f32 %v2697_v40, %v2223_v60  ;;  %v2187_v8 = vmul.f32 %v2693_v6, %v2177_v62  ;;  %v2165_v58 = vmul.f32 %v2691_v51, %v2156_v41  ;;  %v2210_v61 = vmul.f32 %v2695_v55, %v2200_v11 }
 0x663   : > { %v2243_v1 = vadd.f32 %v2698_v63, %v2233_v47  ;;  %v2197_v13 = vadd.f32 %v2694_v4, %v2187_v8  ;;  %v2174_v14 = vadd.f32 %v2692_v29, %v2165_v58  ;;  %v2220_v15 = vadd.f32 %v2696_v9, %v2210_v61 }
 0x665   : > { %v2244_v59 = vpack.c.bf16 %v2243_v1, %v2242_v10  ;;  %v2198_v16 = vpack.c.bf16 %v2197_v13, %v2196_v12  ;;  %v2175_v57 = vpack.c.bf16 %v2174_v14, %v2173_v45  ;;  %v2221_v17 = vpack.c.bf16 %v2220_v15, %v2219_v2 }
 0x667   : > { %2249 = vrot.lane.b32.xlu1 %v2244_v59, %s3197_s29  ;;  %2246 = vrot.lane.b32.xlu0 %v2198_v16, %s3197_s29 }
 0x6d9   : > { %v2250_v24 = vpop.permute.xlu1 %2249  ;;  %v2247_v18 = vpop.permute.xlu0 %2246 }
 0x6da   : > { %v2253_v19 = vsel %vm703_vm7, %v2175_v57, %v2247_v18  ;;  %v2257_v44 = vsel %vm703_vm7, %v2221_v17, %v2250_v24 }
 0x6db   : > { %2426 = vmatprep.mubr.bf16.mxu1 %v2257_v44 }
 0x6dc   : > { %2427 = vmatmul.mubr.bf16.vlgmr.msra.gmra.mxu1 %v2253_v19 }
 0x79c   : > { %v2896_v46 = vpop.f32.mrf.mxu1 }
 0x79e   : > { %v2897_v22 = vpop.f32.mrf.mxu1 }
 0x79f   : > { %v2898_v3 = vadd.f32 %v2897_v22, %v2896_v46 }
 0x7a0   : > { %v2899_v27 = vpop.f32.mrf.mxu1 }
 0x7a1   : > { %v2429_v23 = vadd.f32 %v2898_v3, %v2699_v21 }
 0x7a2   : > { %v2900_v25 = vpop.f32.mrf.mxu1 }
 0x7a3   : > { %2435 = vst [vmem:[%s418_s15] sm:$0xff] %v2429_v23  ;;  %v2901_v26 = vadd.f32 %v2900_v25, %v2899_v27 }
 0x7a5   : > { %v2432_v52 = vadd.f32 %v2901_v26, %v2699_v21 }
 0x7a7   : > { %2436 = vst [vmem:[%s418_s15 + $0x8] sm:$0xff] %v2432_v52 }
 0x7a8 PF: > { %s23_s17 = sadd.s32 1, %s3190_s17  }
 0x7a9   : > { %p20_p3 = scmp.ge.s32.totalorder %s23_s17, 4  }
 0x7ab   :  { %22 = sbr.rel (!%p20_p3) target bundleno = 2 (0x2), region = 109 }
 0x7b0   :  { %2458 = vsyncpa [#allocation3], 1 }
 0x7b1   :  { %2460 = vsyncpa [#allocation3 + $0x1], 1 }
 0x7b2   :  { %2461 = vsyncpa [#allocation5], 1 }

</bundles_post_ra>
